<compile_context>
chip_gen: v7x
topology: tpu7x:2x2x1
jax: 0.10.0
libtpu: 0.0.40
codegen_flags: <defaults>
</compile_context>

<pallas_src>
import jax
import jax.numpy as jnp
from jax.experimental import pallas as pl
from jax.experimental.pallas import tpu as pltpu

HIDDEN = 100                 # self.hidden_size (fixed by the module)
HP = 128                     # lane-padded per-gate width (MXU/lane aligned)
FEATURE_DIM = 2 * HIDDEN     # 100 * n_directions
FP = 2 * HP                  # lane-padded feature width (256)


# ----------------------------------------------------------------------------
# Fused kernel: bi-GRU cell -> weight-norm fc1 -> dropout -> ReLU -> fc2
# ----------------------------------------------------------------------------
def fused_forward_kernel(x_ref, h0_ref, wih_ref, bih_ref, whh_ref, bhh_ref,
                         w1_ref, b1_ref, w2_ref, b2_ref, drop_ref, out_ref):
    x = x_ref[...]                       # (B, dim_in)
    h0 = h0_ref[...]                     # (B, 2*HP): [fwd | bwd], zero-padded

    # All input->hidden gates for both directions in one MXU matmul: (B, 6*HP)
    gi = jnp.dot(x, wih_ref[...], preferred_element_type=jnp.float32) + bih_ref[...]
    # All hidden->hidden gates via the block-diagonal packed weight: (B, 6*HP)
    gh = jnp.dot(h0, whh_ref[...], preferred_element_type=jnp.float32) + bhh_ref[...]

    def gru_direction(d, h_prev):
        # PyTorch GRU gate order (r, z, n); each gate is one 128-lane block.
        #   r = sigmoid(gi_r + gh_r);  z = sigmoid(gi_z + gh_z)
        #   n = tanh(gi_n + r * gh_n); h' = (1 - z) * n + z * h
        o = 3 * d * HP
        r = jax.nn.sigmoid(gi[:, o:o + HP] + gh[:, o:o + HP])
        z = jax.nn.sigmoid(gi[:, o + HP:o + 2 * HP] + gh[:, o + HP:o + 2 * HP])
        n = jnp.tanh(gi[:, o + 2 * HP:o + 3 * HP] + r * gh[:, o + 2 * HP:o + 3 * HP])
        return (1.0 - z) * n + z * h_prev          # padded lanes stay exactly 0

    h_fwd = gru_direction(0, h0[:, 0:HP])
    h_bwd = gru_direction(1, h0[:, HP:2 * HP])

    # hidden_cat = cat([hidden[-1], hidden[-2]], dim=1) = [backward, forward]
    hcat = jnp.concatenate([h_bwd, h_fwd], axis=1)  # (B, 2*HP), lane-dense

    # fc1 (weight-norm folded into the packed (in, out) weight in the wrapper)
    h1 = jnp.dot(hcat, w1_ref[...], preferred_element_type=jnp.float32) + b1_ref[...]
    # nn.Dropout() in training mode: precomputed {0, 2} scale mask
    h1 = h1 * drop_ref[...]
    # ReLU (activations[0])
    h1 = jnp.maximum(h1, 0.0)
    # fc2 (weight-norm + weight_scale folded in the wrapper)
    out_ref[...] = jnp.dot(h1, w2_ref[...], preferred_element_type=jnp.float32) + b2_ref[...]


# ----------------------------------------------------------------------------
# Parameter init (deterministic, matches the shapes implied by __init__)
# ----------------------------------------------------------------------------
def init_params(key, dim_in, dim_out):
    H = HIDDEN
    bound = 1.0 / jnp.sqrt(jnp.float32(H))
    keys = jax.random.split(key, 10)

    def u(kk, shape):
        return jax.random.uniform(kk, shape, jnp.float32, -bound, bound)

    params = {}
    # GRU layer-0, forward direction (PyTorch stores (3H, in); here (3, in, H))
    params["wih_f"] = u(keys[0], (3, dim_in, H))
    params["whh_f"] = u(keys[1], (3, H, H))
    params["bih_f"] = u(keys[2], (3, 1, H))
    params["bhh_f"] = u(keys[3], (3, 1, H))
    # GRU layer-0, reverse direction
    params["wih_b"] = u(keys[4], (3, dim_in, H))
    params["whh_b"] = u(keys[5], (3, H, H))
    params["bih_b"] = u(keys[6], (3, 1, H))
    params["bhh_b"] = u(keys[7], (3, 1, H))
    # fc1 = LinearWeightNorm(200, 200): weight = randn * 0.1, bias = 0
    params["w1"] = 0.1 * jax.random.normal(keys[8], (200, FEATURE_DIM), jnp.float32)
    params["b1"] = jnp.zeros((1, 200), jnp.float32)
    # fc2 = LinearWeightNorm(200, dim_out, weight_scale=1)
    params["w2"] = 0.1 * jax.random.normal(keys[9], (dim_out, 200), jnp.float32)
    params["s2"] = jnp.ones((dim_out, 1), jnp.float32)
    params["b2"] = jnp.zeros((1, dim_out), jnp.float32)
    return params


# ----------------------------------------------------------------------------
# One-time wrapper-side packing: lane-pad gates, fold weight-norm, transpose
# ----------------------------------------------------------------------------
def pack_params(params):
    H = HIDDEN
    dim_out = params["w2"].shape[0]

    def pad_lanes(a, width):
        return jnp.pad(a, [(0, 0)] * (a.ndim - 1) + [(0, width - a.shape[-1])])

    def pack_gates(w3):              # (3, rows, H) -> (rows, 3*HP)
        return jnp.concatenate([pad_lanes(w3[k], HP) for k in range(3)], axis=-1)

    # input->hidden: (dim_in, 6*HP), gate layout [f_r f_z f_n | b_r b_z b_n]
    wih = jnp.concatenate([pack_gates(params["wih_f"]),
                           pack_gates(params["wih_b"])], axis=-1)
    bih = jnp.concatenate([pack_gates(params["bih_f"]),
                           pack_gates(params["bih_b"])], axis=-1)       # (1, 6*HP)
    bhh = jnp.concatenate([pack_gates(params["bhh_f"]),
                           pack_gates(params["bhh_b"])], axis=-1)       # (1, 6*HP)

    # hidden->hidden block-diagonal (2*HP, 6*HP); rows [0:HP]=fwd, [HP:2HP]=bwd
    def pack_hh(w3):                 # (3, H, H) -> (HP, 3*HP)
        return jnp.pad(pack_gates(w3), ((0, HP - H), (0, 0)))
    zblk = jnp.zeros((HP, 3 * HP), jnp.float32)
    whh = jnp.concatenate([
        jnp.concatenate([pack_hh(params["whh_f"]), zblk], axis=1),
        jnp.concatenate([zblk, pack_hh(params["whh_b"])], axis=1)], axis=0)

    # fc1: weight-norm (weight_scale is the python scalar 1), transpose to
    # (in, out), remap rows to padded hcat layout [bwd | pad | fwd | pad].
    # NOTE: no epsilon, mirroring the PyTorch module exactly.
    w1 = params["w1"]                                        # (200, 200) (out, in)
    W1t = (w1 * jax.lax.rsqrt(jnp.sum(w1 * w1, axis=1, keepdims=True))).T
    w1p = jnp.zeros((FP, FP), jnp.float32)
    w1p = w1p.at[0:H, 0:FEATURE_DIM].set(W1t[0:H])           # backward hidden rows
    w1p = w1p.at[HP:HP + H, 0:FEATURE_DIM].set(W1t[H:2 * H]) # forward hidden rows
    b1p = pad_lanes(params["b1"], FP)                        # (1, FP)

    # fc2: weight-norm with per-row weight_scale parameter, transpose, pad rows.
    w2 = params["w2"]                                        # (dim_out, 200)
    W2t = (w2 * params["s2"] *
           jax.lax.rsqrt(jnp.sum(w2 * w2, axis=1, keepdims=True))).T
    w2p = jnp.zeros((FP, dim_out), jnp.float32).at[0:FEATURE_DIM, :].set(W2t)
    b2 = params["b2"]                                        # (1, dim_out)

    return dict(wih=wih, bih=bih, whh=whh, bhh=bhh,
                w1=w1p, b1=b1p, w2=w2p, b2=b2)


# ----------------------------------------------------------------------------
# Forward pass (mirrors NetworkModel.forward)
# ----------------------------------------------------------------------------
def network_model_forward(x, packed, key):
    x = x.astype(jnp.float32)
    B = x.shape[0]
    dim_out = packed["b2"].shape[1]
    k_h, k_drop = jax.random.split(key)

    # __init__hidden: fresh randn(2, B, 100) every forward call; pad per dir.
    h0 = jax.random.normal(k_h, (2, B, HIDDEN), jnp.float32)
    h0p = jnp.zeros((B, FP), jnp.float32)
    h0p = h0p.at[:, 0:HIDDEN].set(h0[0])           # forward direction
    h0p = h0p.at[:, HP:HP + HIDDEN].set(h0[1])     # backward direction

    # nn.Dropout(): training mode, p=0.5, kept values scaled by 1/(1-p)=2.
    keep = jax.random.bernoulli(k_drop, 0.5, (B, FP))
    drop = keep.astype(jnp.float32) * 2.0

    vmem = lambda: pl.BlockSpec(memory_space=pltpu.MemorySpace.VMEM)
    out = pl.pallas_call(
        fused_forward_kernel,
        out_shape=jax.ShapeDtypeStruct((B, dim_out), jnp.float32),
        in_specs=[vmem() for _ in range(11)],
        out_specs=vmem(),
    )(x, h0p, packed["wih"], packed["bih"], packed["whh"], packed["bhh"],
      packed["w1"], packed["b1"], packed["w2"], packed["b2"], drop)
    return out, h0, drop


# ----------------------------------------------------------------------------
# Pure-JAX reference (same randomness), for a correctness smoke check
# ----------------------------------------------------------------------------
def reference_forward(x, params, h0, drop):
    x = x.astype(jnp.float32)
    hi = jax.lax.Precision.HIGHEST

    def gru_dir(h, wih, whh, bih, bhh):
        gi = [jnp.dot(x, wih[k], precision=hi) + bih[k] for k in range(3)]
        gh = [jnp.dot(h, whh[k], precision=hi) + bhh[k] for k in range(3)]
        r = jax.nn.sigmoid(gi[0] + gh[0])
        z = jax.nn.sigmoid(gi[1] + gh[1])
        n = jnp.tanh(gi[2] + r * gh[2])
        return (1.0 - z) * n + z * h

    h_f = gru_dir(h0[0], params["wih_f"], params["whh_f"], params["bih_f"], params["bhh_f"])
    h_b = gru_dir(h0[1], params["wih_b"], params["whh_b"], params["bih_b"], params["bhh_b"])
    hcat = jnp.concatenate([h_b, h_f], axis=1)

    w1 = params["w1"]
    W1 = w1 / jnp.sqrt(jnp.sum(w1 * w1, axis=1, keepdims=True))
    h1 = jnp.dot(hcat, W1.T, precision=hi) + params["b1"]
    h1 = h1 * drop[:, :FEATURE_DIM]
    h1 = jnp.maximum(h1, 0.0)
    w2 = params["w2"]
    W2 = w2 * params["s2"] / jnp.sqrt(jnp.sum(w2 * w2, axis=1, keepdims=True))
    return jnp.dot(h1, W2.T, precision=hi) + params["b2"]


if __name__ == "__main__":
    dim_in, dim_out, batch = 32, 10, 4
    key = jax.random.PRNGKey(0)
    k_param, k_x, k_fwd = jax.random.split(key, 3)

    params = init_params(k_param, dim_in, dim_out)
    packed = pack_params(params)
    x = jax.random.normal(k_x, (batch, dim_in), jnp.float32)

    fwd = jax.jit(network_model_forward)
    out, h0, drop = fwd(x, packed, k_fwd)
    jax.block_until_ready(out)

    assert out.shape == (batch, dim_out) and out.dtype == jnp.float32

    ref = reference_forward(x, params, h0, drop)
    if not jnp.allclose(out, ref, atol=1e-2, rtol=1e-2):
        max_err = float(jnp.max(jnp.abs(out - ref)))
        raise AssertionError(f"kernel/reference mismatch, max abs err = {max_err}")

    print("KERNEL_OK")
</pallas_src>

<mosaic_0001>
module attributes {stable_mosaic.version = 11 : i64} {
  func.func @fused_forward_kernel(%arg0: memref<4x32xf32, #tpu.memory_space<vmem>>, %arg1: memref<4x256xf32, #tpu.memory_space<vmem>>, %arg2: memref<32x768xf32, #tpu.memory_space<vmem>>, %arg3: memref<1x768xf32, #tpu.memory_space<vmem>>, %arg4: memref<256x768xf32, #tpu.memory_space<vmem>>, %arg5: memref<1x768xf32, #tpu.memory_space<vmem>>, %arg6: memref<256x256xf32, #tpu.memory_space<vmem>>, %arg7: memref<1x256xf32, #tpu.memory_space<vmem>>, %arg8: memref<256x10xf32, #tpu.memory_space<vmem>>, %arg9: memref<1x10xf32, #tpu.memory_space<vmem>>, %arg10: memref<4x256xf32, #tpu.memory_space<vmem>>, %arg11: memref<4x10xf32, #tpu.memory_space<vmem>>) attributes {dimension_semantics = [], scalar_prefetch = 0 : i64, scratch_operands = 0 : i64, tpu.core_type = #tpu.core_type<tc>} {
    %c0 = arith.constant 0 : index
    %c0_0 = arith.constant 0 : index
    %0 = vector.load %arg0[%c0, %c0_0] : memref<4x32xf32, #tpu.memory_space<vmem>>, vector<4x32xf32>
    %c0_1 = arith.constant 0 : index
    %c0_2 = arith.constant 0 : index
    %1 = vector.load %arg1[%c0_1, %c0_2] : memref<4x256xf32, #tpu.memory_space<vmem>>, vector<4x256xf32>
    %c0_3 = arith.constant 0 : index
    %c0_4 = arith.constant 0 : index
    %2 = vector.load %arg2[%c0_3, %c0_4] : memref<32x768xf32, #tpu.memory_space<vmem>>, vector<32x768xf32>
    %cst = arith.constant dense<0.000000e+00> : vector<4x768xf32>
    %3 = tpu.matmul %0, %2, %cst {dimension_numbers = #tpu.dot_dimension_numbers<[1], [0], [0], [1], [0, 0, 1, 1], [], []>} : vector<4x32xf32>, vector<32x768xf32>, vector<4x768xf32> -> vector<4x768xf32>
    %c0_5 = arith.constant 0 : index
    %c0_6 = arith.constant 0 : index
    %4 = vector.load %arg3[%c0_5, %c0_6] : memref<1x768xf32, #tpu.memory_space<vmem>>, vector<1x768xf32>
    %5 = vector.broadcast %4 : vector<1x768xf32> to vector<4x768xf32>
    %6 = arith.addf %3, %5 : vector<4x768xf32>
    %c0_7 = arith.constant 0 : index
    %c0_8 = arith.constant 0 : index
    %7 = vector.load %arg4[%c0_7, %c0_8] : memref<256x768xf32, #tpu.memory_space<vmem>>, vector<256x768xf32>
    %cst_9 = arith.constant dense<0.000000e+00> : vector<4x768xf32>
    %8 = tpu.matmul %1, %7, %cst_9 {dimension_numbers = #tpu.dot_dimension_numbers<[1], [0], [0], [1], [0, 0, 1, 1], [], []>} : vector<4x256xf32>, vector<256x768xf32>, vector<4x768xf32> -> vector<4x768xf32>
    %c0_10 = arith.constant 0 : index
    %c0_11 = arith.constant 0 : index
    %9 = vector.load %arg5[%c0_10, %c0_11] : memref<1x768xf32, #tpu.memory_space<vmem>>, vector<1x768xf32>
    %10 = vector.broadcast %9 : vector<1x768xf32> to vector<4x768xf32>
    %11 = arith.addf %8, %10 : vector<4x768xf32>
    %12 = vector.extract_strided_slice %1 {offsets = [0, 0], sizes = [4, 128], strides = [1, 1]} : vector<4x256xf32> to vector<4x128xf32>
    %13 = vector.extract_strided_slice %6 {offsets = [0, 0], sizes = [4, 128], strides = [1, 1]} : vector<4x768xf32> to vector<4x128xf32>
    %14 = vector.extract_strided_slice %11 {offsets = [0, 0], sizes = [4, 128], strides = [1, 1]} : vector<4x768xf32> to vector<4x128xf32>
    %15 = arith.addf %13, %14 : vector<4x128xf32>
    %16 = arith.negf %15 : vector<4x128xf32>
    %17 = math.exp %16 : vector<4x128xf32>
    %cst_12 = arith.constant 1.000000e+00 : f32
    %18 = vector.broadcast %cst_12 : f32 to vector<4x128xf32>
    %19 = arith.addf %18, %17 : vector<4x128xf32>
    %20 = arith.divf %18, %19 : vector<4x128xf32>
    %21 = vector.extract_strided_slice %6 {offsets = [0, 128], sizes = [4, 128], strides = [1, 1]} : vector<4x768xf32> to vector<4x128xf32>
    %22 = vector.extract_strided_slice %11 {offsets = [0, 128], sizes = [4, 128], strides = [1, 1]} : vector<4x768xf32> to vector<4x128xf32>
    %23 = arith.addf %21, %22 : vector<4x128xf32>
    %24 = arith.negf %23 : vector<4x128xf32>
    %25 = math.exp %24 : vector<4x128xf32>
    %cst_13 = arith.constant 1.000000e+00 : f32
    %26 = vector.broadcast %cst_13 : f32 to vector<4x128xf32>
    %27 = arith.addf %26, %25 : vector<4x128xf32>
    %28 = arith.divf %26, %27 : vector<4x128xf32>
    %29 = vector.extract_strided_slice %6 {offsets = [0, 256], sizes = [4, 128], strides = [1, 1]} : vector<4x768xf32> to vector<4x128xf32>
    %30 = vector.extract_strided_slice %11 {offsets = [0, 256], sizes = [4, 128], strides = [1, 1]} : vector<4x768xf32> to vector<4x128xf32>
    %31 = arith.mulf %20, %30 : vector<4x128xf32>
    %32 = arith.addf %29, %31 : vector<4x128xf32>
    %33 = math.tanh %32 : vector<4x128xf32>
    %cst_14 = arith.constant 1.000000e+00 : f32
    %34 = vector.broadcast %cst_14 : f32 to vector<4x128xf32>
    %35 = arith.subf %34, %28 : vector<4x128xf32>
    %36 = arith.mulf %35, %33 : vector<4x128xf32>
    %37 = arith.mulf %28, %12 : vector<4x128xf32>
    %38 = arith.addf %36, %37 : vector<4x128xf32>
    %39 = vector.extract_strided_slice %1 {offsets = [0, 128], sizes = [4, 128], strides = [1, 1]} : vector<4x256xf32> to vector<4x128xf32>
    %40 = vector.extract_strided_slice %6 {offsets = [0, 384], sizes = [4, 128], strides = [1, 1]} : vector<4x768xf32> to vector<4x128xf32>
    %41 = vector.extract_strided_slice %11 {offsets = [0, 384], sizes = [4, 128], strides = [1, 1]} : vector<4x768xf32> to vector<4x128xf32>
    %42 = arith.addf %40, %41 : vector<4x128xf32>
    %43 = arith.negf %42 : vector<4x128xf32>
    %44 = math.exp %43 : vector<4x128xf32>
    %cst_15 = arith.constant 1.000000e+00 : f32
    %45 = vector.broadcast %cst_15 : f32 to vector<4x128xf32>
    %46 = arith.addf %45, %44 : vector<4x128xf32>
    %47 = arith.divf %45, %46 : vector<4x128xf32>
    %48 = vector.extract_strided_slice %6 {offsets = [0, 512], sizes = [4, 128], strides = [1, 1]} : vector<4x768xf32> to vector<4x128xf32>
    %49 = vector.extract_strided_slice %11 {offsets = [0, 512], sizes = [4, 128], strides = [1, 1]} : vector<4x768xf32> to vector<4x128xf32>
    %50 = arith.addf %48, %49 : vector<4x128xf32>
    %51 = arith.negf %50 : vector<4x128xf32>
    %52 = math.exp %51 : vector<4x128xf32>
    %cst_16 = arith.constant 1.000000e+00 : f32
    %53 = vector.broadcast %cst_16 : f32 to vector<4x128xf32>
    %54 = arith.addf %53, %52 : vector<4x128xf32>
    %55 = arith.divf %53, %54 : vector<4x128xf32>
    %56 = vector.extract_strided_slice %6 {offsets = [0, 640], sizes = [4, 128], strides = [1, 1]} : vector<4x768xf32> to vector<4x128xf32>
    %57 = vector.extract_strided_slice %11 {offsets = [0, 640], sizes = [4, 128], strides = [1, 1]} : vector<4x768xf32> to vector<4x128xf32>
    %58 = arith.mulf %47, %57 : vector<4x128xf32>
    %59 = arith.addf %56, %58 : vector<4x128xf32>
    %60 = math.tanh %59 : vector<4x128xf32>
    %cst_17 = arith.constant 1.000000e+00 : f32
    %61 = vector.broadcast %cst_17 : f32 to vector<4x128xf32>
    %62 = arith.subf %61, %55 : vector<4x128xf32>
    %63 = arith.mulf %62, %60 : vector<4x128xf32>
    %64 = arith.mulf %55, %39 : vector<4x128xf32>
    %65 = arith.addf %63, %64 : vector<4x128xf32>
    %66 = tpu.concatenate %65, %38 in 1 : vector<4x128xf32>, vector<4x128xf32> -> vector<4x256xf32>
    %c0_18 = arith.constant 0 : index
    %c0_19 = arith.constant 0 : index
    %67 = vector.load %arg6[%c0_18, %c0_19] : memref<256x256xf32, #tpu.memory_space<vmem>>, vector<256x256xf32>
    %cst_20 = arith.constant dense<0.000000e+00> : vector<4x256xf32>
    %68 = tpu.matmul %66, %67, %cst_20 {dimension_numbers = #tpu.dot_dimension_numbers<[1], [0], [0], [1], [0, 0, 1, 1], [], []>} : vector<4x256xf32>, vector<256x256xf32>, vector<4x256xf32> -> vector<4x256xf32>
    %c0_21 = arith.constant 0 : index
    %c0_22 = arith.constant 0 : index
    %69 = vector.load %arg7[%c0_21, %c0_22] : memref<1x256xf32, #tpu.memory_space<vmem>>, vector<1x256xf32>
    %70 = vector.broadcast %69 : vector<1x256xf32> to vector<4x256xf32>
    %71 = arith.addf %68, %70 : vector<4x256xf32>
    %c0_23 = arith.constant 0 : index
    %c0_24 = arith.constant 0 : index
    %72 = vector.load %arg10[%c0_23, %c0_24] : memref<4x256xf32, #tpu.memory_space<vmem>>, vector<4x256xf32>
    %73 = arith.mulf %71, %72 : vector<4x256xf32>
    %cst_25 = arith.constant 0.000000e+00 : f32
    %74 = vector.broadcast %cst_25 : f32 to vector<4x256xf32>
    %75 = arith.maximumf %73, %74 : vector<4x256xf32>
    %c0_26 = arith.constant 0 : index
    %c0_27 = arith.constant 0 : index
    %76 = vector.load %arg8[%c0_26, %c0_27] : memref<256x10xf32, #tpu.memory_space<vmem>>, vector<256x10xf32>
    %cst_28 = arith.constant dense<0.000000e+00> : vector<4x10xf32>
    %77 = tpu.matmul %75, %76, %cst_28 {dimension_numbers = #tpu.dot_dimension_numbers<[1], [0], [0], [1], [0, 0, 1, 1], [], []>} : vector<4x256xf32>, vector<256x10xf32>, vector<4x10xf32> -> vector<4x10xf32>
    %c0_29 = arith.constant 0 : index
    %c0_30 = arith.constant 0 : index
    %78 = vector.load %arg9[%c0_29, %c0_30] : memref<1x10xf32, #tpu.memory_space<vmem>>, vector<1x10xf32>
    %79 = vector.broadcast %78 : vector<1x10xf32> to vector<4x10xf32>
    %80 = arith.addf %77, %79 : vector<4x10xf32>
    %c0_31 = arith.constant 0 : index
    %c0_32 = arith.constant 0 : index
    %81 = vector.load %arg11[%c0_31, %c0_32] : memref<4x10xf32, #tpu.memory_space<vmem>>, vector<4x10xf32>
    tpu.vector_store %arg11[%c0_31, %c0_32], %80 {strides = array<i32>} : memref<4x10xf32, #tpu.memory_space<vmem>>, vector<4x10xf32>,
    return
  }
}

</mosaic_0001>

<bundles_post_ra>
// kernel: network_model_forward.3
= control target key start
LH: loop header
LB: loop body
LE: loop exit
PB: predicated region body
PF: predicated region fallthrough
CT: control target
= control target key end

     0   :  { %16 = vsyncpa [#allocation3], 0  ;;  %s2209_s0 = inlined_call_operand.hbm [shape: f32[4,32], index: 0, kind: input, shape index: {}]   ;;  %s2210_s1 = inlined_call_operand.vmem [shape: f32[4,256], index: 1, kind: input, shape index: {}]   ;;  %s2211_s2 = inlined_call_operand.hbm [shape: f32[32,768], index: 2, kind: input, shape index: {}]   ;;  %s2212_s3 = inlined_call_operand.hbm [shape: f32[1,768], index: 3, kind: input, shape index: {}]   ;;  %s2213_s4 = inlined_call_operand.hbm [shape: f32[256,768], index: 4, kind: input, shape index: {}]   ;;  %s2214_s5 = inlined_call_operand.hbm [shape: f32[1,768], index: 5, kind: input, shape index: {}]   ;;  %s2215_s6 = inlined_call_operand.vmem [shape: f32[256,256], index: 6, kind: input, shape index: {}]   ;;  %s2216_s7 = inlined_call_operand.hbm [shape: f32[1,256], index: 7, kind: input, shape index: {}]   ;;  %s2217_s8 = inlined_call_operand.vmem [shape: f32[256,10], index: 8, kind: input, shape index: {}]   ;;  %s2218_s9 = inlined_call_operand.vmem [shape: f32[1,10], index: 9, kind: input, shape index: {}]   ;;  %s2219_s10 = inlined_call_operand.vmem [shape: f32[4,256], index: 10, kind: input, shape index: {}]   ;;  %s2220_s11 = inlined_call_operand.hbm [shape: f32[4,10], index: 11, kind: output, shape index: {}]  }
   0x1   :  { %17 = vsyncpa [#allocation6], 0 }
   0x2   :  { %18 = vsyncpa [#allocation9], 0 }
   0x3   :  { %19 = vsyncpa [#allocation12], 0 }
   0x4   :  { %20 = vsyncpa [#allocation4], 0  ;;  %s1711_s17 = smov [#allocation5]   ;;  %s1547_s21 = scalar_lea.hbm %s2211_s2, 3072 }
   0x5   :  { %s38_s18 = sshll.u32 %s1711_s17, 4  ;;  %p1548_p0 = scmp.ne.s32.totalorder %s2211_s2, %s1547_s21  ;;  %s39_s18 = int_to_ptr.vmem [resolvable:$true] %s38_s18 }
   0x6   :  { %p1551_p1 = scmp.lt.u32.totalorder %s1547_s21, %s2211_s2 }
   0x8   :  { %p1553_p2 = pnand %p1551_p1, %p1548_p0 }
   0xa   :  { %1556 = shalt.err (!%p1553_p2)
}
   0xb   :  { %s1557_s26 = scalar_lea.vmem %s39_s18, 3072  ;;  %p1562_p4 = scmp.lt.s32.totalorder %s39_s18, %s39_s18 }
   0xc   :  { %p1558_p3 = scmp.ne.s32.totalorder %s39_s18, %s1557_s26  ;;  %p1563_p5 = scmp.lt.s32.totalorder %s1557_s26, %s1557_s26 }
   0xe   :  { %p1564_p6 = por %p1563_p5, %p1562_p4 }
  0x10   :  { %p1565_p7 = pnand %p1564_p6, %p1558_p3 }
  0x12   :  { %1568 = shalt.err (!%p1565_p7)
}
  0x13   :  { %s1712_s27 = smov 768   ;;  %s1713_s28 = smov 48  }
  0x14   :  { %44 = dma.hbm_to_vmem [thread:$0]  %s2211_s2, 3072, %s39_s18, [#allocation6], %s1712_s27, %s1712_s27, %s1713_s28  }
  0x15   :  { %s1714_s12 = smov [#allocation8]   ;;  %s1715_s14 = smov [#allocation2]  }
  0x16   :  { %s60_s13 = sshll.u32 %s1714_s12, 4  ;;  %s27_s15 = sshll.u32 %s1715_s14, 4  ;;  %s61_s13 = int_to_ptr.vmem [resolvable:$true] %s60_s13  ;;  %s28_s15 = int_to_ptr.vmem [resolvable:$true] %s27_s15 }
  0x17   :  { %s1569_s19 = scalar_lea.hbm %s2213_s4, 24576 }
  0x18   :  { %p1570_p8 = scmp.ne.s32.totalorder %s2213_s4, %s1569_s19  ;;  %p1573_p9 = scmp.lt.u32.totalorder %s1569_s19, %s2213_s4 }
  0x1a   :  { %p1575_p10 = pnand %p1573_p9, %p1570_p8 }
  0x1c   :  { %1578 = shalt.err (!%p1575_p10)
}
  0x1d   :  { %s1579_s2 = scalar_lea.vmem %s61_s13, 24576  ;;  %p1584_p12 = scmp.lt.s32.totalorder %s61_s13, %s61_s13 }
  0x1e   :  { %p1580_p11 = scmp.ne.s32.totalorder %s61_s13, %s1579_s2  ;;  %p1585_p13 = scmp.lt.s32.totalorder %s1579_s2, %s1579_s2 }
  0x20   :  { %p1586_p0 = por %p1585_p13, %p1584_p12 }
  0x22   :  { %p1587_p1 = pnand %p1586_p0, %p1580_p11 }
  0x24   :  { %1590 = shalt.err (!%p1587_p1)
}
  0x25   :  { %66 = dma.hbm_to_vmem [thread:$0]  %s2213_s4, 24576, %s61_s13, [#allocation9], %s1712_s27, %s1712_s27, %s1713_s28  }
  0x26   :  { %s1591_s29 = scalar_lea.hbm %s2209_s0, 64 }
  0x27   :  { %p1592_p2 = scmp.ne.s32.totalorder %s2209_s0, %s1591_s29  ;;  %p1595_p3 = scmp.lt.u32.totalorder %s1591_s29, %s2209_s0 }
  0x29   :  { %p1597_p4 = pnand %p1595_p3, %p1592_p2 }
  0x2b   :  { %1600 = shalt.err (!%p1597_p4)
}
  0x2c   :  { %s1601_s17 = scalar_lea.vmem %s28_s15, 64  ;;  %p1606_p6 = scmp.lt.s32.totalorder %s28_s15, %s28_s15 }
  0x2d   :  { %p1602_p5 = scmp.ne.s32.totalorder %s28_s15, %s1601_s17  ;;  %p1607_p7 = scmp.lt.s32.totalorder %s1601_s17, %s1601_s17 }
  0x2f   :  { %p1608_p8 = por %p1607_p7, %p1606_p6 }
  0x31   :  { %p1609_p9 = pnand %p1608_p8, %p1602_p5 }
  0x33   :  { %1612 = shalt.err (!%p1609_p9)
}
  0x34   :  { %30 = dma.hbm_to_vmem [thread:$0]  %s2209_s0, 64, %s28_s15, [#allocation3]  }
  0x35   :  { %s1716_s28 = smov [#allocation7]   ;;  %s1717_s19 = smov [#allocation10]  }
  0x36   :  { %s51_s13 = sshll.u32 %s1716_s28, 4  ;;  %s73_s20 = sshll.u32 %s1717_s19, 4  ;;  %s52_s13 = int_to_ptr.vmem [resolvable:$true] %s51_s13  ;;  %s74_s20 = int_to_ptr.vmem [resolvable:$true] %s73_s20 }
  0x37   :  { %s1613_s23 = scalar_lea.hbm %s2212_s3, 96 }
  0x38   :  { %p1614_p10 = scmp.ne.s32.totalorder %s2212_s3, %s1613_s23  ;;  %p1617_p11 = scmp.lt.u32.totalorder %s1613_s23, %s2212_s3 }
  0x3a   :  { %p1619_p12 = pnand %p1617_p11, %p1614_p10 }
  0x3c   :  { %1622 = shalt.err (!%p1619_p12)
}
  0x3d   :  { %s1623_s0 = scalar_lea.vmem %s52_s13, 96  ;;  %p1628_p0 = scmp.lt.s32.totalorder %s52_s13, %s52_s13 }
  0x3e   :  { %p1624_p13 = scmp.ne.s32.totalorder %s52_s13, %s1623_s0  ;;  %p1629_p1 = scmp.lt.s32.totalorder %s1623_s0, %s1623_s0 }
  0x40   :  { %p1630_p2 = por %p1629_p1, %p1628_p0 }
  0x42   :  { %p1631_p3 = pnand %p1630_p2, %p1624_p13 }
  0x44   :  { %1634 = shalt.err (!%p1631_p3)
}
  0x45   :  { %54 = dma.hbm_to_vmem [thread:$0]  %s2212_s3, 96, %s52_s13, [#allocation6]  }
  0x46   :  { %s1635_s12 = scalar_lea.hbm %s2214_s5, 96 }
  0x47   :  { %p1636_p4 = scmp.ne.s32.totalorder %s2214_s5, %s1635_s12  ;;  %p1639_p5 = scmp.lt.u32.totalorder %s1635_s12, %s2214_s5 }
  0x49   :  { %p1641_p6 = pnand %p1639_p5, %p1636_p4 }
  0x4b   :  { %1644 = shalt.err (!%p1641_p6)
}
  0x4c   :  { %s1645_s27 = scalar_lea.vmem %s74_s20, 96  ;;  %p1650_p8 = scmp.lt.s32.totalorder %s74_s20, %s74_s20 }
  0x4d   :  { %p1646_p7 = scmp.ne.s32.totalorder %s74_s20, %s1645_s27  ;;  %p1651_p9 = scmp.lt.s32.totalorder %s1645_s27, %s1645_s27 }
  0x4f   :  { %p1652_p10 = por %p1651_p9, %p1650_p8 }
  0x51   :  { %p1653_p11 = pnand %p1652_p10, %p1646_p7 }
  0x53   :  { %1656 = shalt.err (!%p1653_p11)
}
  0x54   :  { %76 = dma.hbm_to_vmem [thread:$0]  %s2214_s5, 96, %s74_s20, [#allocation9]  }
  0x55   :  { %s1718_s13 = smov [#allocation11]   ;;  %s1657_s23 = scalar_lea.hbm %s2216_s7, 32 }
  0x56   :  { %s85_s19 = sshll.u32 %s1718_s13, 4  ;;  %p1658_p12 = scmp.ne.s32.totalorder %s2216_s7, %s1657_s23  ;;  %s86_s19 = int_to_ptr.vmem [resolvable:$true] %s85_s19 }
  0x57   :  { %p1661_p13 = scmp.lt.u32.totalorder %s1657_s23, %s2216_s7 }
  0x59   :  { %p1663_p0 = pnand %p1661_p13, %p1658_p12 }
  0x5b   :  { %1666 = shalt.err (!%p1663_p0)
}
  0x5c   :  { %s1667_s0 = scalar_lea.vmem %s86_s19, 32  ;;  %p1672_p2 = scmp.lt.s32.totalorder %s86_s19, %s86_s19 }
  0x5d   :  { %p1668_p1 = scmp.ne.s32.totalorder %s86_s19, %s1667_s0  ;;  %p1673_p3 = scmp.lt.s32.totalorder %s1667_s0, %s1667_s0 }
  0x5f   :  { %p1674_p4 = por %p1673_p3, %p1672_p2 }
  0x61   :  { %p1675_p5 = pnand %p1674_p4, %p1668_p1 }
  0x63   :  { %1678 = shalt.err (!%p1675_p5)
}
  0x64   :  { %88 = dma.hbm_to_vmem [thread:$0]  %s2216_s7, 32, %s86_s19, [#allocation12]  }
  0x65   :  { %1701 = dma.done.wait [#allocation3], 64  }
  0x66   :  { %1702 = vsyncadd [#allocation3], 4294967232 }
  0x67   :  { %1703 = dma.done.wait [#allocation6], 3168  }
  0x68   :  { %1704 = vsyncadd [#allocation6], 4294964128 }
  0x69   :  { %1705 = dma.done.wait [#allocation9], 24672  }
  0x6a   :  { %1706 = vsyncadd [#allocation9], 4294942624 }
  0x6b   :  { %1707 = dma.done.wait [#allocation12], 32  }
  0x6c   :  { %1708 = vsyncadd [#allocation12], 4294967264  ;;  %v1719_v0 = vmov 0.0   ;;  %v116_v1 = vld [vmem:[#allocation5 + $0x8] sm:$0xff]  ;;  %v122_v2 = vld [vmem:[#allocation5 + $0x38] sm:$0xff]  ;;  %vm171_vm0 = vcmask 261120  }
  0x6d   :  { %239 = vmatprep.mubr.f32.mxu0 %v1719_v0  ;;  %v391_v3 = vld [vmem:[#allocation8 + $0x18] sm:$0xff]  ;;  %v1197_v4 = vpack.c.bf16 %v122_v2, %v116_v1  ;;  %v397_v5 = vld [vmem:[#allocation8 + $0x48] sm:$0xff]  ;;  %v390_v10 = vld [vmem:[#allocation8 + $0x10] sm:$0xff]  ;;  %vm1134_vm1 = vcmask 76800  }
  0x6e   :  { %v115_v6 = vld [vmem:[#allocation5] sm:$0xff]  ;;  %v121_v7 = vld [vmem:[#allocation5 + $0x30] sm:$0xff]  ;;  %v1285_v8 = vpack.c.bf16 %v397_v5, %v391_v3  ;;  %v128_v12 = vld [vmem:[#allocation5 + $0x68] sm:$0xff] }
  0x6f   :  { %v1199_v9 = vpack.c.bf16 %v121_v7, %v115_v6  ;;  %v396_v11 = vld [vmem:[#allocation8 + $0x40] sm:$0xff]  ;;  %1198 = vmatprep.subr.bf16.mxu0 %v1197_v4  ;;  %v134_v14 = vld [vmem:[#allocation5 + $0x98] sm:$0xff]  ;;  %v409_v16 = vld [vmem:[#allocation8 + $0xa8] sm:$0xff] }
  0x70   :  { %v1287_v13 = vpack.c.bf16 %v396_v11, %v390_v10  ;;  %v403_v15 = vld [vmem:[#allocation8 + $0x78] sm:$0xff]  ;;  %1286 = vmatprep.subr.bf16.mxu1 %v1285_v8  ;;  %v1201_v17 = vpack.c.bf16 %v134_v14, %v128_v12  ;;  %v133_v20 = vld [vmem:[#allocation5 + $0x90] sm:$0xff]  ;;  %v408_v23 = vld [vmem:[#allocation8 + $0xa0] sm:$0xff] }
  0x71   :  { %1200 = vmatpush1.bf16.msra.mxu0 %v1199_v9  ;;  %v1289_v18 = vpack.c.bf16 %v409_v16, %v403_v15  ;;  %v127_v19 = vld [vmem:[#allocation5 + $0x60] sm:$0xff]  ;;  %v402_v21 = vld [vmem:[#allocation8 + $0x70] sm:$0xff]  ;;  %v124_v25 = vld [vmem:[#allocation5 + $0x48] sm:$0xff] }
  0x72   :  { %1288 = vmatpush1.bf16.msra.mxu1 %v1287_v13  ;;  %v1203_v22 = vpack.c.bf16 %v133_v20, %v127_v19  ;;  %v118_v24 = vld [vmem:[#allocation5 + $0x18] sm:$0xff]  ;;  %1202 = vmatprep.subr.bf16.mxu0 %v1201_v17  ;;  %v1291_v26 = vpack.c.bf16 %v408_v23, %v402_v21  ;;  %v421_v29 = vld [vmem:[#allocation8 + $0x108] sm:$0xff]  ;;  %v123_v33 = vld [vmem:[#allocation5 + $0x40] sm:$0xff] }
  0x73   :  { %1290 = vmatprep.subr.bf16.mxu1 %v1289_v18  ;;  %v1205_v27 = vpack.c.bf16 %v124_v25, %v118_v24  ;;  %v415_v28 = vld [vmem:[#allocation8 + $0xd8] sm:$0xff]  ;;  %v117_v32 = vld [vmem:[#allocation5 + $0x10] sm:$0xff]  ;;  %v420_v36 = vld [vmem:[#allocation8 + $0x100] sm:$0xff] }
  0x74   :  { %v1854_v30 = vld [vmem:[#allocation2] sm:$0xf]  ;;  %v1293_v31 = vpack.c.bf16 %v421_v29, %v415_v28  ;;  %v1207_v35 = vpack.c.bf16 %v123_v33, %v117_v32  ;;  %v136_v38 = vld [vmem:[#allocation5 + $0xa8] sm:$0xff]  ;;  %v129_v43 = vld [vmem:[#allocation5 + $0x70] sm:$0xff] }
  0x75   :  { %v414_v34 = vld [vmem:[#allocation8 + $0xd0] sm:$0xff]  ;;  %1204 = vmatpush1.bf16.msra.mxu0 %v1203_v22  ;;  %v427_v41 = vld [vmem:[#allocation8 + $0x138] sm:$0xff]  ;;  %v433_v42 = vld [vmem:[#allocation8 + $0x168] sm:$0xff] }
  0x76   :  { %v130_v37 = vld [vmem:[#allocation5 + $0x78] sm:$0xff]  ;;  %1292 = vmatpush1.bf16.msra.mxu1 %v1291_v26  ;;  %1206 = vmatprep.subr.bf16.mxu0 %v1205_v27  ;;  %v1295_v39 = vpack.c.bf16 %v420_v36, %v414_v34  ;;  %v1297_v44 = vpack.c.bf16 %v433_v42, %v427_v41  ;;  %v135_v45 = vld [vmem:[#allocation5 + $0xa0] sm:$0xff]  ;;  %v120_v48 = vld [vmem:[#allocation5 + $0x28] sm:$0xff] }
  0x77   :  { %v1209_v40 = vpack.c.bf16 %v136_v38, %v130_v37  ;;  %1294 = vmatprep.subr.bf16.mxu1 %v1293_v31  ;;  %v426_v46 = vld [vmem:[#allocation8 + $0x130] sm:$0xff]  ;;  %v432_v47 = vld [vmem:[#allocation8 + $0x160] sm:$0xff]  ;;  %v439_v50 = vld [vmem:[#allocation8 + $0x198] sm:$0xff]  ;;  %v1211_v51 = vpack.c.bf16 %v135_v45, %v129_v43 }
  0x78   :  { %1154 = vmatmul.mubr.msk.f32.vlgmr.msra.gmra.mrb[0].mxu0 %vm171_vm0, %v1854_v30  ;;  %v126_v49 = vld [vmem:[#allocation5 + $0x58] sm:$0xff]  ;;  %v445_v52 = vld [vmem:[#allocation8 + $0x1c8] sm:$0xff]  ;;  %v1299_v53 = vpack.c.bf16 %v432_v47, %v426_v46  ;;  %v119_v55 = vld [vmem:[#allocation5 + $0x20] sm:$0xff] }
  0x79   :  { %1208 = vmatpush1.bf16.msra.mxu0 %v1207_v35  ;;  %310 = vmatprep.mubr.f32.mxu0 %v1719_v0  ;;  %v1213_v54 = vpack.c.bf16 %v126_v49, %v120_v48  ;;  %v125_v56 = vld [vmem:[#allocation5 + $0x50] sm:$0xff]  ;;  %v1301_v58 = vpack.c.bf16 %v445_v52, %v439_v50  ;;  %v444_v59 = vld [vmem:[#allocation8 + $0x1c0] sm:$0xff]  ;;  %v138_v61 = vld [vmem:[#allocation5 + $0xb8] sm:$0xff] }
  0x7a   :  { %1296 = vmatpush1.bf16.msra.mxu1 %v1295_v39  ;;  %1210 = vmatprep.subr.bf16.mxu0 %v1209_v40  ;;  %v438_v57 = vld [vmem:[#allocation8 + $0x190] sm:$0xff]  ;;  %v132_v60 = vld [vmem:[#allocation5 + $0x88] sm:$0xff]  ;;  %v451_v62 = vld [vmem:[#allocation8 + $0x1f8] sm:$0xff]  ;;  %v1215_v1 = vpack.c.bf16 %v125_v56, %v119_v55 }
  0x7b   :  { %1298 = vmatprep.subr.bf16.mxu1 %v1297_v44  ;;  %v457_v63 = vld [vmem:[#allocation8 + $0x228] sm:$0xff]  ;;  %v1303_v2 = vpack.c.bf16 %v444_v59, %v438_v57  ;;  %v1217_v3 = vpack.c.bf16 %v138_v61, %v132_v60  ;;  %v131_v4 = vld [vmem:[#allocation5 + $0x80] sm:$0xff]  ;;  %v450_v6 = vld [vmem:[#allocation8 + $0x1f0] sm:$0xff] }
  0x7c   :  { %v137_v5 = vld [vmem:[#allocation5 + $0xb0] sm:$0xff]  ;;  %v1305_v7 = vpack.c.bf16 %v457_v63, %v451_v62  ;;  %v456_v8 = vld [vmem:[#allocation8 + $0x220] sm:$0xff]  ;;  %v395_v10 = vld [vmem:[#allocation8 + $0x38] sm:$0xff] }
  0x7d   :  { %1212 = vmatpush1.bf16.msra.mxu0 %v1211_v51  ;;  %v389_v9 = vld [vmem:[#allocation8 + $0x8] sm:$0xff]  ;;  %v463_v11 = vld [vmem:[#allocation8 + $0x258] sm:$0xff]  ;;  %v1219_v13 = vpack.c.bf16 %v137_v5, %v131_v4  ;;  %v1307_v14 = vpack.c.bf16 %v456_v8, %v450_v6  ;;  %v388_v16 = vld [vmem:[#allocation8] sm:$0xff] }
  0x7e   :  { %1300 = vmatpush1.bf16.msra.mxu1 %v1299_v53  ;;  %1214 = vmatprep.subr.bf16.mxu0 %v1213_v54  ;;  %v469_v12 = vld [vmem:[#allocation8 + $0x288] sm:$0xff]  ;;  %v1221_v15 = vpack.c.bf16 %v395_v10, %v389_v9  ;;  %v394_v17 = vld [vmem:[#allocation8 + $0x30] sm:$0xff]  ;;  %v468_v20 = vld [vmem:[#allocation8 + $0x280] sm:$0xff] }
  0x7f   :  { %1302 = vmatprep.subr.bf16.mxu1 %v1301_v58  ;;  %v462_v18 = vld [vmem:[#allocation8 + $0x250] sm:$0xff]  ;;  %v1309_v19 = vpack.c.bf16 %v469_v12, %v463_v11  ;;  %v401_v21 = vld [vmem:[#allocation8 + $0x68] sm:$0xff]  ;;  %v407_v22 = vld [vmem:[#allocation8 + $0x98] sm:$0xff]  ;;  %v1223_v25 = vpack.c.bf16 %v394_v17, %v388_v16 }
  0x80   :  { %1155 = vmatmul.mubr.msk.f32.vlgmr.msra.gmra.mrb[2].mxu0 %vm171_vm0, %v1854_v30  ;;  %v475_v23 = vld [vmem:[#allocation8 + $0x2b8] sm:$0xff]  ;;  %v481_v24 = vld [vmem:[#allocation8 + $0x2e8] sm:$0xff]  ;;  %v1311_v26 = vpack.c.bf16 %v468_v20, %v462_v18  ;;  %v400_v27 = vld [vmem:[#allocation8 + $0x60] sm:$0xff] }
  0x81   :  { %1216 = vmatpush1.bf16.msra.mxu0 %v1215_v1  ;;  %381 = vmatprep.mubr.f32.mxu0 %v1719_v0  ;;  %v1225_v0 = vpack.c.bf16 %v407_v22, %v401_v21  ;;  %v406_v28 = vld [vmem:[#allocation8 + $0x90] sm:$0xff]  ;;  %v1313_v31 = vpack.c.bf16 %v481_v24, %v475_v23  ;;  %v480_v32 = vld [vmem:[#allocation8 + $0x2e0] sm:$0xff]  ;;  %v413_v33 = vld [vmem:[#allocation8 + $0xc8] sm:$0xff] }
  0x82   :  { %1304 = vmatpush1.bf16.msra.mxu1 %v1303_v2  ;;  %1218 = vmatprep.subr.bf16.mxu0 %v1217_v3  ;;  %v474_v29 = vld [vmem:[#allocation8 + $0x2b0] sm:$0xff]  ;;  %v419_v34 = vld [vmem:[#allocation8 + $0xf8] sm:$0xff]  ;;  %v493_v36 = vld [vmem:[#allocation8 + $0x348] sm:$0xff]  ;;  %v1227_v37 = vpack.c.bf16 %v406_v28, %v400_v27 }
  0x83   :  { %1306 = vmatprep.subr.bf16.mxu1 %v1305_v7  ;;  %v487_v35 = vld [vmem:[#allocation8 + $0x318] sm:$0xff]  ;;  %v1315_v38 = vpack.c.bf16 %v480_v32, %v474_v29  ;;  %v1229_v39 = vpack.c.bf16 %v419_v34, %v413_v33  ;;  %v412_v40 = vld [vmem:[#allocation8 + $0xc0] sm:$0xff]  ;;  %v418_v41 = vld [vmem:[#allocation8 + $0xf0] sm:$0xff] }
  0x84   :  { %v486_v42 = vld [vmem:[#allocation8 + $0x310] sm:$0xff]  ;;  %v1317_v43 = vpack.c.bf16 %v493_v36, %v487_v35  ;;  %v492_v44 = vld [vmem:[#allocation8 + $0x340] sm:$0xff]  ;;  %v425_v45 = vld [vmem:[#allocation8 + $0x128] sm:$0xff] }
  0x85   :  { %1220 = vmatpush1.bf16.msra.mxu0 %v1219_v13  ;;  %v431_v46 = vld [vmem:[#allocation8 + $0x158] sm:$0xff]  ;;  %v505_v48 = vld [vmem:[#allocation8 + $0x3a8] sm:$0xff]  ;;  %v1319_v49 = vpack.c.bf16 %v492_v44, %v486_v42  ;;  %v424_v51 = vld [vmem:[#allocation8 + $0x120] sm:$0xff] }
  0x86   :  { %1308 = vmatpush1.bf16.msra.mxu1 %v1307_v14  ;;  %1222 = vmatprep.subr.bf16.mxu0 %v1221_v15  ;;  %v499_v47 = vld [vmem:[#allocation8 + $0x378] sm:$0xff]  ;;  %v1233_v50 = vpack.c.bf16 %v431_v46, %v425_v45  ;;  %v430_v52 = vld [vmem:[#allocation8 + $0x150] sm:$0xff]  ;;  %v504_v55 = vld [vmem:[#allocation8 + $0x3a0] sm:$0xff] }
  0x87   :  { %1310 = vmatprep.subr.bf16.mxu1 %v1309_v19  ;;  %v498_v53 = vld [vmem:[#allocation8 + $0x370] sm:$0xff]  ;;  %v1321_v54 = vpack.c.bf16 %v505_v48, %v499_v47  ;;  %v437_v56 = vld [vmem:[#allocation8 + $0x188] sm:$0xff]  ;;  %v443_v57 = vld [vmem:[#allocation8 + $0x1b8] sm:$0xff]  ;;  %v1235_v60 = vpack.c.bf16 %v430_v52, %v424_v51 }
  0x88   :  { %1156 = vmatmul.mubr.msk.f32.vlgmr.msra.gmra.mrb[4].mxu0 %vm171_vm0, %v1854_v30  ;;  %v1231_v30 = vpack.c.bf16 %v418_v41, %v412_v40  ;;  %v511_v58 = vld [vmem:[#allocation8 + $0x3d8] sm:$0xff]  ;;  %v517_v59 = vld [vmem:[#allocation8 + $0x408] sm:$0xff]  ;;  %v1323_v61 = vpack.c.bf16 %v504_v55, %v498_v53  ;;  %v1237_v62 = vpack.c.bf16 %v443_v57, %v437_v56  ;;  %v436_v63 = vld [vmem:[#allocation8 + $0x180] sm:$0xff] }
  0x89   :  { %1224 = vmatpush1.bf16.msra.mxu0 %v1223_v25  ;;  %v442_v1 = vld [vmem:[#allocation8 + $0x1b0] sm:$0xff]  ;;  %v1325_v3 = vpack.c.bf16 %v517_v59, %v511_v58  ;;  %v516_v4 = vld [vmem:[#allocation8 + $0x400] sm:$0xff]  ;;  %v449_v5 = vld [vmem:[#allocation8 + $0x1e8] sm:$0xff] }
  0x8a   :  { %1312 = vmatpush1.bf16.msra.mxu1 %v1311_v26  ;;  %1226 = vmatprep.subr.bf16.mxu0 %v1225_v0  ;;  %v510_v2 = vld [vmem:[#allocation8 + $0x3d0] sm:$0xff]  ;;  %v455_v6 = vld [vmem:[#allocation8 + $0x218] sm:$0xff]  ;;  %v529_v8 = vld [vmem:[#allocation8 + $0x468] sm:$0xff]  ;;  %v1239_v9 = vpack.c.bf16 %v442_v1, %v436_v63 }
  0x8b   :  { %1314 = vmatprep.subr.bf16.mxu1 %v1313_v31  ;;  %v523_v7 = vld [vmem:[#allocation8 + $0x438] sm:$0xff]  ;;  %v1327_v10 = vpack.c.bf16 %v516_v4, %v510_v2  ;;  %v1241_v11 = vpack.c.bf16 %v455_v6, %v449_v5  ;;  %v448_v12 = vld [vmem:[#allocation8 + $0x1e0] sm:$0xff]  ;;  %v454_v13 = vld [vmem:[#allocation8 + $0x210] sm:$0xff] }
  0x8c   :  { %v522_v14 = vld [vmem:[#allocation8 + $0x430] sm:$0xff]  ;;  %v1329_v15 = vpack.c.bf16 %v529_v8, %v523_v7  ;;  %v528_v16 = vld [vmem:[#allocation8 + $0x460] sm:$0xff]  ;;  %v461_v17 = vld [vmem:[#allocation8 + $0x248] sm:$0xff]  ;;  %v1243_v22 = vpack.c.bf16 %v454_v13, %v448_v12 }
  0x8d   :  { %1228 = vmatpush1.bf16.msra.mxu0 %v1227_v37  ;;  %v467_v18 = vld [vmem:[#allocation8 + $0x278] sm:$0xff]  ;;  %v541_v20 = vld [vmem:[#allocation8 + $0x4c8] sm:$0xff]  ;;  %v1331_v24 = vpack.c.bf16 %v528_v16, %v522_v14  ;;  %v460_v26 = vld [vmem:[#allocation8 + $0x240] sm:$0xff] }
  0x8e   :  { %1316 = vmatpush1.bf16.msra.mxu1 %v1315_v38  ;;  %1230 = vmatprep.subr.bf16.mxu0 %v1229_v39  ;;  %v535_v19 = vld [vmem:[#allocation8 + $0x498] sm:$0xff]  ;;  %v1245_v25 = vpack.c.bf16 %v467_v18, %v461_v17  ;;  %v466_v0 = vld [vmem:[#allocation8 + $0x270] sm:$0xff]  ;;  %v540_v29 = vld [vmem:[#allocation8 + $0x4c0] sm:$0xff] }
  0x8f   :  { %1318 = vmatprep.subr.bf16.mxu1 %v1317_v43  ;;  %v1867_v21 = vld [vmem:[%s2210_s1] sm:$0xff]  ;;  %v1333_v28 = vpack.c.bf16 %v541_v20, %v535_v19  ;;  %v473_v31 = vld [vmem:[#allocation8 + $0x2a8] sm:$0xff]  ;;  %v1247_v35 = vpack.c.bf16 %v466_v0, %v460_v26  ;;  %v472_v38 = vld [vmem:[#allocation8 + $0x2a0] sm:$0xff] }
  0x90   :  { %v1871_v23 = vcombine.high %v1867_v21, %v1867_v21  ;;  %v534_v27 = vld [vmem:[#allocation8 + $0x490] sm:$0xff]  ;;  %v479_v32 = vld [vmem:[#allocation8 + $0x2d8] sm:$0xff]  ;;  %v553_v34 = vld [vmem:[#allocation8 + $0x528] sm:$0xff] }
  0x91   :  { %1232 = vmatpush1.bf16.msra.mxu0 %v1231_v30  ;;  %v547_v33 = vld [vmem:[#allocation8 + $0x4f8] sm:$0xff]  ;;  %v1335_v36 = vpack.c.bf16 %v540_v29, %v534_v27  ;;  %v1249_v37 = vpack.c.bf16 %v479_v32, %v473_v31  ;;  %v478_v39 = vld [vmem:[#allocation8 + $0x2d0] sm:$0xff]  ;;  %v552_v42 = vld [vmem:[#allocation8 + $0x520] sm:$0xff] }
  0x92   :  { %1320 = vmatpush1.bf16.msra.mxu1 %v1319_v49  ;;  %1234 = vmatprep.subr.bf16.mxu0 %v1233_v50  ;;  %v546_v40 = vld [vmem:[#allocation8 + $0x4f0] sm:$0xff]  ;;  %v1337_v41 = vpack.c.bf16 %v553_v34, %v547_v33  ;;  %v485_v43 = vld [vmem:[#allocation8 + $0x308] sm:$0xff]  ;;  %v491_v44 = vld [vmem:[#allocation8 + $0x338] sm:$0xff]  ;;  %v1251_v47 = vpack.c.bf16 %v478_v39, %v472_v38 }
  0x93   :  { %1322 = vmatprep.subr.bf16.mxu1 %v1321_v54  ;;  %750 = vmatprep.mubr.f32.mxu1 %v1871_v23  ;;  %v559_v45 = vld [vmem:[#allocation8 + $0x558] sm:$0xff]  ;;  %v565_v46 = vld [vmem:[#allocation8 + $0x588] sm:$0xff]  ;;  %v1339_v48 = vpack.c.bf16 %v552_v42, %v546_v40  ;;  %v1253_v30 = vpack.c.bf16 %v491_v44, %v485_v43  ;;  %v484_v49 = vld [vmem:[#allocation8 + $0x300] sm:$0xff] }
  0x94   :  { %679 = vmatprep.mubr.f32.mxu0 %v1871_v23  ;;  %v490_v50 = vld [vmem:[#allocation8 + $0x330] sm:$0xff]  ;;  %v1341_v52 = vpack.c.bf16 %v565_v46, %v559_v45  ;;  %v564_v53 = vld [vmem:[#allocation8 + $0x580] sm:$0xff]  ;;  %v497_v54 = vld [vmem:[#allocation8 + $0x368] sm:$0xff] }
  0x95   :  { %1236 = vmatpush1.bf16.msra.mxu0 %v1235_v60  ;;  %v558_v51 = vld [vmem:[#allocation8 + $0x550] sm:$0xff]  ;;  %v503_v55 = vld [vmem:[#allocation8 + $0x398] sm:$0xff]  ;;  %v577_v57 = vld [vmem:[#allocation8 + $0x5e8] sm:$0xff]  ;;  %v1255_v58 = vpack.c.bf16 %v490_v50, %v484_v49 }
  0x96   :  { %1324 = vmatpush1.bf16.msra.mxu1 %v1323_v61  ;;  %1238 = vmatprep.subr.bf16.mxu0 %v1237_v62  ;;  %v571_v56 = vld [vmem:[#allocation8 + $0x5b8] sm:$0xff]  ;;  %v1343_v59 = vpack.c.bf16 %v564_v53, %v558_v51  ;;  %v1257_v60 = vpack.c.bf16 %v503_v55, %v497_v54  ;;  %v496_v61 = vld [vmem:[#allocation8 + $0x360] sm:$0xff]  ;;  %v502_v62 = vld [vmem:[#allocation8 + $0x390] sm:$0xff] }
  0x97   :  { %1326 = vmatprep.subr.bf16.mxu1 %v1325_v3  ;;  %v570_v63 = vld [vmem:[#allocation8 + $0x5b0] sm:$0xff]  ;;  %v1345_v1 = vpack.c.bf16 %v577_v57, %v571_v56  ;;  %v576_v2 = vld [vmem:[#allocation8 + $0x5e0] sm:$0xff]  ;;  %v509_v3 = vld [vmem:[#allocation8 + $0x3c8] sm:$0xff]  ;;  %v1259_v7 = vpack.c.bf16 %v502_v62, %v496_v61 }
  0x98   :  { %v515_v4 = vld [vmem:[#allocation8 + $0x3f8] sm:$0xff]  ;;  %v393_v5 = vld [vmem:[#allocation8 + $0x28] sm:$0xff]  ;;  %v1347_v8 = vpack.c.bf16 %v576_v2, %v570_v63  ;;  %v392_v12 = vld [vmem:[#allocation8 + $0x20] sm:$0xff] }
  0x99   :  { %1240 = vmatpush1.bf16.msra.mxu0 %v1239_v9  ;;  %v399_v6 = vld [vmem:[#allocation8 + $0x58] sm:$0xff]  ;;  %v1261_v9 = vpack.c.bf16 %v515_v4, %v509_v3  ;;  %v398_v14 = vld [vmem:[#allocation8 + $0x50] sm:$0xff]  ;;  %v405_v17 = vld [vmem:[#allocation8 + $0x88] sm:$0xff] }
  0x9a   :  { %1328 = vmatpush1.bf16.msra.mxu1 %v1327_v10  ;;  %1242 = vmatprep.subr.bf16.mxu0 %v1241_v11  ;;  %v508_v10 = vld [vmem:[#allocation8 + $0x3c0] sm:$0xff]  ;;  %v514_v11 = vld [vmem:[#allocation8 + $0x3f0] sm:$0xff]  ;;  %v1349_v13 = vpack.c.bf16 %v399_v6, %v393_v5  ;;  %v527_v16 = vld [vmem:[#allocation8 + $0x458] sm:$0xff]  ;;  %v1351_v20 = vpack.c.bf16 %v398_v14, %v392_v12 }
  0x9b   :  { %1330 = vmatprep.subr.bf16.mxu1 %v1329_v15  ;;  %v521_v15 = vld [vmem:[#allocation8 + $0x428] sm:$0xff]  ;;  %v411_v18 = vld [vmem:[#allocation8 + $0xb8] sm:$0xff]  ;;  %v1263_v19 = vpack.c.bf16 %v514_v11, %v508_v10  ;;  %v404_v26 = vld [vmem:[#allocation8 + $0x80] sm:$0xff] }
  0x9c   :  { %v1353_v0 = vpack.c.bf16 %v411_v18, %v405_v17  ;;  %v410_v27 = vld [vmem:[#allocation8 + $0xb0] sm:$0xff]  ;;  %v539_v29 = vld [vmem:[#allocation8 + $0x4b8] sm:$0xff]  ;;  %v417_v31 = vld [vmem:[#allocation8 + $0xe8] sm:$0xff] }
  0x9d   :  { %1244 = vmatpush1.bf16.msra.mxu0 %v1243_v22  ;;  %v1265_v22 = vpack.c.bf16 %v527_v16, %v521_v15  ;;  %v423_v32 = vld [vmem:[#allocation8 + $0x118] sm:$0xff]  ;;  %v1355_v34 = vpack.c.bf16 %v410_v27, %v404_v26  ;;  %v416_v38 = vld [vmem:[#allocation8 + $0xe0] sm:$0xff]  ;;  %v422_v40 = vld [vmem:[#allocation8 + $0x110] sm:$0xff] }
  0x9e   :  { %1332 = vmatpush1.bf16.msra.mxu1 %v1331_v24  ;;  %1246 = vmatprep.subr.bf16.mxu0 %v1245_v25  ;;  %v520_v24 = vld [vmem:[#allocation8 + $0x420] sm:$0xff]  ;;  %v526_v25 = vld [vmem:[#allocation8 + $0x450] sm:$0xff]  ;;  %v1357_v39 = vpack.c.bf16 %v423_v32, %v417_v31  ;;  %v551_v42 = vld [vmem:[#allocation8 + $0x518] sm:$0xff]  ;;  %v1359_v46 = vpack.c.bf16 %v422_v40, %v416_v38 }
  0x9f   :  { %1334 = vmatprep.subr.bf16.mxu1 %v1333_v28  ;;  %v533_v28 = vld [vmem:[#allocation8 + $0x488] sm:$0xff]  ;;  %v1267_v33 = vpack.c.bf16 %v526_v25, %v520_v24  ;;  %v435_v44 = vld [vmem:[#allocation8 + $0x178] sm:$0xff]  ;;  %v428_v49 = vld [vmem:[#allocation8 + $0x140] sm:$0xff] }
  0xa0   :  { %v429_v43 = vld [vmem:[#allocation8 + $0x148] sm:$0xff]  ;;  %v434_v51 = vld [vmem:[#allocation8 + $0x170] sm:$0xff]  ;;  %v563_v53 = vld [vmem:[#allocation8 + $0x578] sm:$0xff] }
  0xa1   :  { %1248 = vmatpush1.bf16.msra.mxu0 %v1247_v35  ;;  %v1269_v35 = vpack.c.bf16 %v539_v29, %v533_v28  ;;  %v1361_v50 = vpack.c.bf16 %v435_v44, %v429_v43  ;;  %v441_v54 = vld [vmem:[#allocation8 + $0x1a8] sm:$0xff]  ;;  %v447_v55 = vld [vmem:[#allocation8 + $0x1d8] sm:$0xff]  ;;  %v1363_v57 = vpack.c.bf16 %v434_v51, %v428_v49  ;;  %v440_v61 = vld [vmem:[#allocation8 + $0x1a0] sm:$0xff] }
  0xa2   :  { %1336 = vmatpush1.bf16.msra.mxu1 %v1335_v36  ;;  %1250 = vmatprep.subr.bf16.mxu0 %v1249_v37  ;;  %v532_v36 = vld [vmem:[#allocation8 + $0x480] sm:$0xff]  ;;  %v538_v37 = vld [vmem:[#allocation8 + $0x4b0] sm:$0xff]  ;;  %v1365_v62 = vpack.c.bf16 %v447_v55, %v441_v54  ;;  %v575_v2 = vld [vmem:[#allocation8 + $0x5d8] sm:$0xff] }
  0xa3   :  { %1338 = vmatprep.subr.bf16.mxu1 %v1337_v41  ;;  %v545_v41 = vld [vmem:[#allocation8 + $0x4e8] sm:$0xff]  ;;  %v1271_v45 = vpack.c.bf16 %v538_v37, %v532_v36  ;;  %v446_v63 = vld [vmem:[#allocation8 + $0x1d0] sm:$0xff]  ;;  %v459_v4 = vld [vmem:[#allocation8 + $0x238] sm:$0xff] }
  0xa4   :  { %v453_v3 = vld [vmem:[#allocation8 + $0x208] sm:$0xff]  ;;  %v1367_v6 = vpack.c.bf16 %v446_v63, %v440_v61  ;;  %v452_v11 = vld [vmem:[#allocation8 + $0x200] sm:$0xff]  ;;  %v458_v12 = vld [vmem:[#allocation8 + $0x230] sm:$0xff] }
  0xa5   :  { %1252 = vmatpush1.bf16.msra.mxu0 %v1251_v47  ;;  %v1273_v47 = vpack.c.bf16 %v551_v42, %v545_v41  ;;  %v1369_v10 = vpack.c.bf16 %v459_v4, %v453_v3  ;;  %v471_v14 = vld [vmem:[#allocation8 + $0x298] sm:$0xff]  ;;  %v1371_v16 = vpack.c.bf16 %v458_v12, %v452_v11  ;;  %v464_v18 = vld [vmem:[#allocation8 + $0x260] sm:$0xff]  ;;  %v489_v27 = vld [vmem:[#allocation8 + $0x328] sm:$0xff] }
  0xa6   :  { %1340 = vmatpush1.bf16.msra.mxu1 %v1339_v48  ;;  %1254 = vmatprep.subr.bf16.mxu0 %v1253_v30  ;;  %v544_v48 = vld [vmem:[#allocation8 + $0x4e0] sm:$0xff]  ;;  %v550_v30 = vld [vmem:[#allocation8 + $0x510] sm:$0xff]  ;;  %v495_v28 = vld [vmem:[#allocation8 + $0x358] sm:$0xff] }
  0xa7   :  { %1342 = vmatprep.subr.bf16.mxu1 %v1341_v52  ;;  %v557_v52 = vld [vmem:[#allocation8 + $0x548] sm:$0xff]  ;;  %v1275_v56 = vpack.c.bf16 %v550_v30, %v544_v48  ;;  %v476_v26 = vld [vmem:[#allocation8 + $0x2c0] sm:$0xff]  ;;  %v1381_v31 = vpack.c.bf16 %v495_v28, %v489_v27  ;;  %v519_v41 = vld [vmem:[#allocation8 + $0x418] sm:$0xff] }
  0xa8   :  { %v488_v32 = vld [vmem:[#allocation8 + $0x320] sm:$0xff]  ;;  %v513_v40 = vld [vmem:[#allocation8 + $0x3e8] sm:$0xff]  ;;  %v578_v11 = vld [vmem:[#allocation8 + $0x5f0] sm:$0xff] }
  0xa9   :  { %1256 = vmatpush1.bf16.msra.mxu0 %v1255_v58  ;;  %v1277_v58 = vpack.c.bf16 %v563_v53, %v557_v52  ;;  %v500_v38 = vld [vmem:[#allocation8 + $0x380] sm:$0xff]  ;;  %v1389_v43 = vpack.c.bf16 %v519_v41, %v513_v40  ;;  %v537_v51 = vld [vmem:[#allocation8 + $0x4a8] sm:$0xff]  ;;  %v543_v52 = vld [vmem:[#allocation8 + $0x4d8] sm:$0xff] }
  0xaa   :  { %1344 = vmatpush1.bf16.msra.mxu1 %v1343_v59  ;;  %1258 = vmatprep.subr.bf16.mxu0 %v1257_v60  ;;  %v556_v59 = vld [vmem:[#allocation8 + $0x540] sm:$0xff]  ;;  %v562_v60 = vld [vmem:[#allocation8 + $0x570] sm:$0xff]  ;;  %v1397_v54 = vpack.c.bf16 %v543_v52, %v537_v51  ;;  %v561_v63 = vld [vmem:[#allocation8 + $0x568] sm:$0xff] }
  0xab   :  { %1346 = vmatprep.subr.bf16.mxu1 %v1345_v1  ;;  %v569_v1 = vld [vmem:[#allocation8 + $0x5a8] sm:$0xff]  ;;  %v1279_v5 = vpack.c.bf16 %v562_v60, %v556_v59  ;;  %v512_v44 = vld [vmem:[#allocation8 + $0x3e0] sm:$0xff] }
  0xac   :  { %v524_v49 = vld [vmem:[#allocation8 + $0x440] sm:$0xff]  ;;  %v881_v27 = vld [vmem:[%s2215_s6 + $0x58] sm:$0xff] }
  0xad   :  { %1260 = vmatpush1.bf16.msra.mxu0 %v1259_v7  ;;  %v1281_v7 = vpack.c.bf16 %v575_v2, %v569_v1  ;;  %v536_v55 = vld [vmem:[#allocation8 + $0x4a0] sm:$0xff]  ;;  %v567_v1 = vld [vmem:[#allocation8 + $0x598] sm:$0xff]  ;;  %v889_v40 = vld [vmem:[%s2215_s6 + $0x98] sm:$0xff] }
  0xae   :  { %1348 = vmatpush1.bf16.msra.mxu1 %v1347_v8  ;;  %1262 = vmatprep.subr.bf16.mxu0 %v1261_v9  ;;  %v568_v8 = vld [vmem:[#allocation8 + $0x5a0] sm:$0xff]  ;;  %v574_v9 = vld [vmem:[#allocation8 + $0x5d0] sm:$0xff]  ;;  %v1405_v3 = vpack.c.bf16 %v567_v1, %v561_v63 }
  0xaf   :  { %1350 = vmatprep.subr.bf16.mxu1 %v1349_v13  ;;  %v465_v13 = vld [vmem:[#allocation8 + $0x268] sm:$0xff]  ;;  %v1283_v15 = vpack.c.bf16 %v574_v9, %v568_v8  ;;  %v548_v61 = vld [vmem:[#allocation8 + $0x500] sm:$0xff] }
  0xb0   :  { %v1373_v17 = vpack.c.bf16 %v471_v14, %v465_v13  ;;  %v560_v4 = vld [vmem:[#allocation8 + $0x560] sm:$0xff]  ;;  %v873_v14 = vld [vmem:[%s2215_s6 + $0x18] sm:$0xff] }
  0xb1   :  { %751 = vmatmul.mubr.f32.vlgmr.msra.gmra.mrb[0].mxu1 %v1867_v21  ;;  %1264 = vmatpush1.bf16.msra.mxu0 %v1263_v19  ;;  %v470_v19 = vld [vmem:[#allocation8 + $0x290] sm:$0xff]  ;;  %v871_v13 = vld [vmem:[%s2215_s6 + $0x8] sm:$0xff] }
  0xb2   :  { %1352 = vmatpush1.bf16.msra.mxu1 %v1351_v20  ;;  %1266 = vmatprep.subr.bf16.mxu0 %v1265_v22  ;;  %v477_v20 = vld [vmem:[#allocation8 + $0x2c8] sm:$0xff]  ;;  %v483_v22 = vld [vmem:[#allocation8 + $0x2f8] sm:$0xff]  ;;  %v1375_v24 = vpack.c.bf16 %v470_v19, %v464_v18 }
  0xb3   :  { %1354 = vmatprep.subr.bf16.mxu1 %v1353_v0  ;;  %821 = vmatprep.mubr.f32.mxu1 %v1871_v23  ;;  %v1377_v25 = vpack.c.bf16 %v483_v22, %v477_v20  ;;  %v482_v0 = vld [vmem:[#allocation8 + $0x2f0] sm:$0xff]  ;;  %v875_v19 = vld [vmem:[%s2215_s6 + $0x28] sm:$0xff] }
  0xb4   :  { %v1379_v29 = vpack.c.bf16 %v482_v0, %v476_v26  ;;  %v877_v20 = vld [vmem:[%s2215_s6 + $0x38] sm:$0xff]  ;;  %v879_v0 = vld [vmem:[%s2215_s6 + $0x48] sm:$0xff] }
  0xb5   :  { %1268 = vmatpush1.bf16.msra.mxu0 %v1267_v33  ;;  %v494_v33 = vld [vmem:[#allocation8 + $0x350] sm:$0xff]  ;;  %v1417_v22 = vpack.c.bf16 %v877_v20, %v875_v19  ;;  %v1421_v28 = vpack.c.bf16 %v881_v27, %v879_v0  ;;  %v919_v0 = vld [vmem:[%s2215_s6 + $0x188] sm:$0xff] }
  0xb6   :  { %1356 = vmatpush1.bf16.msra.mxu1 %v1355_v34  ;;  %1270 = vmatprep.subr.bf16.mxu0 %v1269_v35  ;;  %v501_v34 = vld [vmem:[#allocation8 + $0x388] sm:$0xff]  ;;  %v507_v35 = vld [vmem:[#allocation8 + $0x3b8] sm:$0xff]  ;;  %v1383_v36 = vpack.c.bf16 %v494_v33, %v488_v32 }
  0xb7   :  { %1358 = vmatprep.subr.bf16.mxu1 %v1357_v39  ;;  %v1385_v37 = vpack.c.bf16 %v507_v35, %v501_v34  ;;  %v506_v39 = vld [vmem:[#allocation8 + $0x3b0] sm:$0xff]  ;;  %v883_v33 = vld [vmem:[%s2215_s6 + $0x68] sm:$0xff] }
  0xb8   :  { %v1387_v42 = vpack.c.bf16 %v506_v39, %v500_v38  ;;  %v885_v34 = vld [vmem:[%s2215_s6 + $0x78] sm:$0xff]  ;;  %v887_v39 = vld [vmem:[%s2215_s6 + $0x88] sm:$0xff] }
  0xb9   :  { %1272 = vmatpush1.bf16.msra.mxu0 %v1271_v45  ;;  %v518_v45 = vld [vmem:[#allocation8 + $0x410] sm:$0xff]  ;;  %v1425_v35 = vpack.c.bf16 %v885_v34, %v883_v33  ;;  %v1429_v41 = vpack.c.bf16 %v889_v40, %v887_v39  ;;  %v923_v33 = vld [vmem:[%s2215_s6 + $0x1a8] sm:$0xff] }
  0xba   :  { %1360 = vmatpush1.bf16.msra.mxu1 %v1359_v46  ;;  %1274 = vmatprep.subr.bf16.mxu0 %v1273_v47  ;;  %v525_v46 = vld [vmem:[#allocation8 + $0x448] sm:$0xff]  ;;  %v531_v47 = vld [vmem:[#allocation8 + $0x478] sm:$0xff]  ;;  %v1391_v48 = vpack.c.bf16 %v518_v45, %v512_v44 }
  0xbb   :  { %1362 = vmatprep.subr.bf16.mxu1 %v1361_v50  ;;  %v1393_v30 = vpack.c.bf16 %v531_v47, %v525_v46  ;;  %v530_v50 = vld [vmem:[#allocation8 + $0x470] sm:$0xff]  ;;  %v891_v45 = vld [vmem:[%s2215_s6 + $0xa8] sm:$0xff] }
  0xbc   :  { %v1395_v53 = vpack.c.bf16 %v530_v50, %v524_v49  ;;  %v893_v46 = vld [vmem:[%s2215_s6 + $0xb8] sm:$0xff]  ;;  %v890_v47 = vld [vmem:[%s2215_s6 + $0xa0] sm:$0xff]  ;;  %v895_v49 = vld [vmem:[%s2215_s6 + $0xc8] sm:$0xff] }
  0xbd   :  { %1276 = vmatpush1.bf16.msra.mxu0 %v1275_v56  ;;  %v542_v56 = vld [vmem:[#allocation8 + $0x4d0] sm:$0xff] }
  0xbe   :  { %1364 = vmatpush1.bf16.msra.mxu1 %v1363_v57  ;;  %1278 = vmatprep.subr.bf16.mxu0 %v1277_v58  ;;  %v549_v57 = vld [vmem:[#allocation8 + $0x508] sm:$0xff]  ;;  %v555_v58 = vld [vmem:[#allocation8 + $0x538] sm:$0xff]  ;;  %v1399_v59 = vpack.c.bf16 %v542_v56, %v536_v55 }
  0xbf   :  { %1366 = vmatprep.subr.bf16.mxu1 %v1365_v62  ;;  %v1401_v60 = vpack.c.bf16 %v555_v58, %v549_v57  ;;  %v554_v62 = vld [vmem:[#allocation8 + $0x530] sm:$0xff]  ;;  %v899_v56 = vld [vmem:[%s2215_s6 + $0xe8] sm:$0xff] }
  0xc0   :  { %v1403_v2 = vpack.c.bf16 %v554_v62, %v548_v61  ;;  %v897_v50 = vld [vmem:[%s2215_s6 + $0xd8] sm:$0xff]  ;;  %v903_v62 = vld [vmem:[%s2215_s6 + $0x108] sm:$0xff] }
  0xc1   :  { %1280 = vmatpush1.bf16.msra.mxu0 %v1279_v5  ;;  %v566_v5 = vld [vmem:[#allocation8 + $0x590] sm:$0xff]  ;;  %v1437_v52 = vpack.c.bf16 %v897_v50, %v895_v49  ;;  %v932_v50 = vld [vmem:[%s2215_s6 + $0x1f0] sm:$0xff] }
  0xc2   :  { %1368 = vmatpush1.bf16.msra.mxu1 %v1367_v6  ;;  %1282 = vmatprep.subr.bf16.mxu0 %v1281_v7  ;;  %v573_v6 = vld [vmem:[#allocation8 + $0x5c8] sm:$0xff]  ;;  %v579_v7 = vld [vmem:[#allocation8 + $0x5f8] sm:$0xff]  ;;  %v1407_v8 = vpack.c.bf16 %v566_v5, %v560_v4 }
  0xc3   :  { %1370 = vmatprep.subr.bf16.mxu1 %v1369_v10  ;;  %v1409_v9 = vpack.c.bf16 %v579_v7, %v573_v6  ;;  %v572_v10 = vld [vmem:[#allocation8 + $0x5c0] sm:$0xff]  ;;  %v901_v57 = vld [vmem:[%s2215_s6 + $0xf8] sm:$0xff]  ;;  %v930_v49 = vld [vmem:[%s2215_s6 + $0x1e0] sm:$0xff] }
  0xc4   :  { %v1411_v12 = vpack.c.bf16 %v578_v11, %v572_v10  ;;  %v1441_v58 = vpack.c.bf16 %v901_v57, %v899_v56  ;;  %v905_v63 = vld [vmem:[%s2215_s6 + $0x118] sm:$0xff]  ;;  %v907_v5 = vld [vmem:[%s2215_s6 + $0x128] sm:$0xff]  ;;  %v1043_v57 = vld [vmem:[%s2217_s8 + $0x90] sm:$0xff] }
  0xc5   :  { %1284 = vmatpush1.bf16.msra.mxu0 %v1283_v15  ;;  %v1413_v15 = vpack.c.bf16 %v873_v14, %v871_v13  ;;  %v1445_v1 = vpack.c.bf16 %v905_v63, %v903_v62  ;;  %v909_v6 = vld [vmem:[%s2215_s6 + $0x138] sm:$0xff]  ;;  %v911_v11 = vld [vmem:[%s2215_s6 + $0x148] sm:$0xff]  ;;  %v910_v14 = vld [vmem:[%s2215_s6 + $0x140] sm:$0xff] }
  0xc6   :  { %1372 = vmatpush1.bf16.msra.mxu1 %v1371_v16  ;;  %v870_v16 = vld [vmem:[%s2215_s6] sm:$0xff]  ;;  %v1449_v7 = vpack.c.bf16 %v909_v6, %v907_v5  ;;  %v921_v27 = vld [vmem:[%s2215_s6 + $0x198] sm:$0xff]  ;;  %v1026_v56 = vld [vmem:[%s2217_s8 + $0x8] sm:$0xff] }
  0xc7   :  { %1374 = vmatprep.subr.bf16.mxu1 %v1373_v17  ;;  %v872_v17 = vld [vmem:[%s2215_s6 + $0x10] sm:$0xff]  ;;  %1414 = vmatprep.subr.bf16.mxu0 %v1413_v15  ;;  %v925_v34 = vld [vmem:[%s2215_s6 + $0x1b8] sm:$0xff]  ;;  %v1045_v63 = vld [vmem:[%s2217_s8 + $0xa0] sm:$0xff] }
  0xc8   :  { %680 = vmatmul.mubr.f32.vlgmr.msra.gmra.mrb[0].mxu0 %v1867_v21  ;;  %v1415_v18 = vpack.c.bf16 %v872_v17, %v870_v16  ;;  %v912_v15 = vld [vmem:[%s2215_s6 + $0x150] sm:$0xff]  ;;  %v915_v17 = vld [vmem:[%s2215_s6 + $0x168] sm:$0xff]  ;;  %v929_v39 = vld [vmem:[%s2215_s6 + $0x1d8] sm:$0xff] }
  0xc9   :  { %v1455_v16 = vpack.c.bf16 %v912_v15, %v910_v14  ;;  %v1028_v62 = vld [vmem:[%s2217_s8 + $0x18] sm:$0xff]  ;;  %v1030_v5 = vld [vmem:[%s2217_s8 + $0x28] sm:$0xff]  ;;  %v1047_v6 = vld [vmem:[%s2217_s8 + $0xb0] sm:$0xff]  ;;  %v141_v15 = vlaneseq }
  0xca   :  { %1376 = vmatpush1.bf16.msra.mxu1 %v1375_v24  ;;  %1416 = vmatpush1.bf16.msra.mxu0 %v1415_v18  ;;  %v874_v24 = vld [vmem:[%s2215_s6 + $0x20] sm:$0xff]  ;;  %v917_v18 = vld [vmem:[%s2215_s6 + $0x178] sm:$0xff] }
  0xcb   :  { %1378 = vmatprep.subr.bf16.mxu1 %v1377_v25  ;;  %v876_v25 = vld [vmem:[%s2215_s6 + $0x30] sm:$0xff]  ;;  %1418 = vmatprep.subr.bf16.mxu0 %v1417_v22  ;;  %v1457_v20 = vpack.c.bf16 %v917_v18, %v915_v17  ;;  %v914_v22 = vld [vmem:[%s2215_s6 + $0x160] sm:$0xff]  ;;  %v1034_v18 = vld [vmem:[%s2217_s8 + $0x48] sm:$0xff] }
  0xcc   :  { %v1419_v26 = vpack.c.bf16 %v876_v25, %v874_v24  ;;  %v916_v24 = vld [vmem:[%s2215_s6 + $0x170] sm:$0xff]  ;;  %v1033_v17 = vld [vmem:[%s2217_s8 + $0x40] sm:$0xff] }
  0xce   :  { %1380 = vmatpush1.bf16.msra.mxu1 %v1379_v29  ;;  %1420 = vmatpush1.bf16.msra.mxu0 %v1419_v26  ;;  %v878_v29 = vld [vmem:[%s2215_s6 + $0x40] sm:$0xff]  ;;  %v1459_v26 = vpack.c.bf16 %v916_v24, %v914_v22  ;;  %v1052_v22 = vld [vmem:[%s2217_s8 + $0xd8] sm:$0xff]  ;;  %v1495_v24 = vpack.c.bf16 %v1034_v18, %v1033_v17 }
  0xcf   :  { %1382 = vmatprep.subr.bf16.mxu1 %v1381_v31  ;;  %v880_v31 = vld [vmem:[%s2215_s6 + $0x50] sm:$0xff]  ;;  %1422 = vmatprep.subr.bf16.mxu0 %v1421_v28  ;;  %v1461_v28 = vpack.c.bf16 %v921_v27, %v919_v0 }
  0xd0   :  { %v1423_v32 = vpack.c.bf16 %v880_v31, %v878_v29  ;;  %v918_v29 = vld [vmem:[%s2215_s6 + $0x180] sm:$0xff]  ;;  %v920_v31 = vld [vmem:[%s2215_s6 + $0x190] sm:$0xff] }
  0xd1   :  { %v1035_v27 = vld [vmem:[%s2217_s8 + $0x50] sm:$0xff] }
  0xd2   :  { %1384 = vmatpush1.bf16.msra.mxu1 %v1383_v36  ;;  %1424 = vmatpush1.bf16.msra.mxu0 %v1423_v32  ;;  %v882_v36 = vld [vmem:[%s2215_s6 + $0x60] sm:$0xff]  ;;  %v1463_v32 = vpack.c.bf16 %v920_v31, %v918_v29 }
  0xd3   :  { %1386 = vmatprep.subr.bf16.mxu1 %v1385_v37  ;;  %v884_v37 = vld [vmem:[%s2215_s6 + $0x70] sm:$0xff]  ;;  %1426 = vmatprep.subr.bf16.mxu0 %v1425_v35  ;;  %v922_v35 = vld [vmem:[%s2215_s6 + $0x1a0] sm:$0xff] }
  0xd4   :  { %v1427_v38 = vpack.c.bf16 %v884_v37, %v882_v36  ;;  %v1465_v36 = vpack.c.bf16 %v925_v34, %v923_v33  ;;  %v924_v37 = vld [vmem:[%s2215_s6 + $0x1b0] sm:$0xff]  ;;  %v580_v33 = vld [vmem:[#allocation10] sm:$0x3f] }
  0xd5   :  { %v1467_v40 = vpack.c.bf16 %v924_v37, %v922_v35 }
  0xd6   :  { %1388 = vmatpush1.bf16.msra.mxu1 %v1387_v42  ;;  %1428 = vmatpush1.bf16.msra.mxu0 %v1427_v38  ;;  %v886_v42 = vld [vmem:[%s2215_s6 + $0x80] sm:$0xff]  ;;  %v927_v38 = vld [vmem:[%s2215_s6 + $0x1c8] sm:$0xff] }
  0xd7   :  { %1390 = vmatprep.subr.bf16.mxu1 %v1389_v43  ;;  %v888_v43 = vld [vmem:[%s2215_s6 + $0x90] sm:$0xff]  ;;  %1430 = vmatprep.subr.bf16.mxu0 %v1429_v41 }
  0xd8   :  { %v1431_v44 = vpack.c.bf16 %v888_v43, %v886_v42  ;;  %v1469_v42 = vpack.c.bf16 %v929_v39, %v927_v38  ;;  %v926_v43 = vld [vmem:[%s2215_s6 + $0x1c0] sm:$0xff] }
  0xda   :  { %1392 = vmatpush1.bf16.msra.mxu1 %v1391_v48  ;;  %v1433_v48 = vpack.c.bf16 %v893_v46, %v891_v45  ;;  %1432 = vmatpush1.bf16.msra.mxu0 %v1431_v44  ;;  %v928_v44 = vld [vmem:[%s2215_s6 + $0x1d0] sm:$0xff]  ;;  %v931_v46 = vld [vmem:[%s2215_s6 + $0x1e8] sm:$0xff] }
  0xdb   :  { %1394 = vmatprep.subr.bf16.mxu1 %v1393_v30  ;;  %v892_v30 = vld [vmem:[%s2215_s6 + $0xb0] sm:$0xff] }
  0xdc   :  { %v1435_v51 = vpack.c.bf16 %v892_v30, %v890_v47  ;;  %1434 = vmatprep.subr.bf16.mxu0 %v1433_v48  ;;  %v933_v47 = vld [vmem:[%s2215_s6 + $0x1f8] sm:$0xff]  ;;  %v1471_v48 = vpack.c.bf16 %v928_v44, %v926_v43 }
  0xdd   :  { %v1473_v30 = vpack.c.bf16 %v933_v47, %v931_v46 }
  0xde   :  { %1396 = vmatpush1.bf16.msra.mxu1 %v1395_v53  ;;  %v894_v53 = vld [vmem:[%s2215_s6 + $0xc0] sm:$0xff]  ;;  %1436 = vmatpush1.bf16.msra.mxu0 %v1435_v51  ;;  %v1475_v51 = vpack.c.bf16 %v932_v50, %v930_v49 }
  0xdf   :  { %1398 = vmatprep.subr.bf16.mxu1 %v1397_v54  ;;  %v896_v54 = vld [vmem:[%s2215_s6 + $0xd0] sm:$0xff]  ;;  %1438 = vmatprep.subr.bf16.mxu0 %v1437_v52  ;;  %v1041_v52 = vld [vmem:[%s2217_s8 + $0x80] sm:$0xff] }
  0xe0   :  { %v1439_v55 = vpack.c.bf16 %v896_v54, %v894_v53  ;;  %v1042_v53 = vld [vmem:[%s2217_s8 + $0x88] sm:$0xff]  ;;  %v1025_v54 = vld [vmem:[%s2217_s8] sm:$0xff] }
  0xe2   :  { %1400 = vmatpush1.bf16.msra.mxu1 %v1399_v59  ;;  %1440 = vmatpush1.bf16.msra.mxu0 %v1439_v55  ;;  %v898_v59 = vld [vmem:[%s2215_s6 + $0xe0] sm:$0xff]  ;;  %v1477_v55 = vpack.c.bf16 %v1042_v53, %v1041_v52 }
  0xe3   :  { %1402 = vmatprep.subr.bf16.mxu1 %v1401_v60  ;;  %v900_v60 = vld [vmem:[%s2215_s6 + $0xf0] sm:$0xff]  ;;  %1442 = vmatprep.subr.bf16.mxu0 %v1441_v58  ;;  %v1044_v58 = vld [vmem:[%s2217_s8 + $0x98] sm:$0xff] }
  0xe4   :  { %v1443_v61 = vpack.c.bf16 %v900_v60, %v898_v59  ;;  %v1479_v59 = vpack.c.bf16 %v1026_v56, %v1025_v54  ;;  %v1481_v60 = vpack.c.bf16 %v1044_v58, %v1043_v57 }
  0xe6   :  { %1404 = vmatpush1.bf16.msra.mxu1 %v1403_v2  ;;  %1444 = vmatpush1.bf16.msra.mxu0 %v1443_v61  ;;  %v902_v2 = vld [vmem:[%s2215_s6 + $0x100] sm:$0xff]  ;;  %v1027_v61 = vld [vmem:[%s2217_s8 + $0x10] sm:$0xff] }
  0xe7   :  { %1406 = vmatprep.subr.bf16.mxu1 %v1405_v3  ;;  %v904_v3 = vld [vmem:[%s2215_s6 + $0x110] sm:$0xff]  ;;  %1446 = vmatprep.subr.bf16.mxu0 %v1445_v1  ;;  %v1046_v1 = vld [vmem:[%s2217_s8 + $0xa8] sm:$0xff] }
  0xe8   :  { %v1447_v4 = vpack.c.bf16 %v904_v3, %v902_v2  ;;  %v1483_v2 = vpack.c.bf16 %v1028_v62, %v1027_v61  ;;  %v1485_v3 = vpack.c.bf16 %v1046_v1, %v1045_v63 }
  0xea   :  { %1408 = vmatpush1.bf16.msra.mxu1 %v1407_v8  ;;  %1448 = vmatpush1.bf16.msra.mxu0 %v1447_v4  ;;  %v906_v8 = vld [vmem:[%s2215_s6 + $0x120] sm:$0xff] }
  0xeb   :  { %1410 = vmatprep.subr.bf16.mxu1 %v1409_v9  ;;  %v908_v9 = vld [vmem:[%s2215_s6 + $0x130] sm:$0xff]  ;;  %1450 = vmatprep.subr.bf16.mxu0 %v1449_v7  ;;  %v1029_v4 = vld [vmem:[%s2217_s8 + $0x20] sm:$0xff]  ;;  %v1048_v7 = vld [vmem:[%s2217_s8 + $0xb8] sm:$0xff] }
  0xec   :  { %v1451_v10 = vpack.c.bf16 %v908_v9, %v906_v8  ;;  %v1487_v8 = vpack.c.bf16 %v1030_v5, %v1029_v4  ;;  %v1489_v9 = vpack.c.bf16 %v1048_v7, %v1047_v6 }
  0xee   :  { %1412 = vmatpush1.bf16.msra.mxu1 %v1411_v12  ;;  %1452 = vmatpush1.bf16.msra.mxu0 %v1451_v10  ;;  %v913_v12 = vld [vmem:[%s2215_s6 + $0x158] sm:$0xff]  ;;  %v1031_v10 = vld [vmem:[%s2217_s8 + $0x30] sm:$0xff] }
  0xef   :  { %v1453_v13 = vpack.c.bf16 %v913_v12, %v911_v11  ;;  %1478 = vmatprep.subr.bf16.mxu1 %v1477_v55  ;;  %v1032_v11 = vld [vmem:[%s2217_s8 + $0x38] sm:$0xff]  ;;  %v1049_v12 = vld [vmem:[%s2217_s8 + $0xc0] sm:$0xff] }
  0xf0   :  { %v1491_v14 = vpack.c.bf16 %v1032_v11, %v1031_v10 }
  0xf1   :  { %822 = vmatmul.mubr.f32.vlgmr.msra.gmra.mrb[2].mxu1 %v1867_v21  ;;  %1454 = vmatprep.subr.bf16.mxu0 %v1453_v13  ;;  %v1050_v13 = vld [vmem:[%s2217_s8 + $0xc8] sm:$0xff] }
  0xf2   :  { %1456 = vmatpush1.bf16.msra.mxu0 %v1455_v16  ;;  %1480 = vmatpush3.bf16.msra.mxu1 %v1479_v59  ;;  %v1493_v16 = vpack.c.bf16 %v1050_v13, %v1049_v12 }
  0xf3   :  { %1458 = vmatprep.subr.bf16.mxu0 %v1457_v20  ;;  %1482 = vmatprep.subr.bf16.mxu1 %v1481_v60  ;;  %v1051_v20 = vld [vmem:[%s2217_s8 + $0xd0] sm:$0xff] }
  0xf4   :  { %v1497_v0 = vpack.c.bf16 %v1052_v22, %v1051_v20 }
  0xf6   :  { %1460 = vmatpush1.bf16.msra.mxu0 %v1459_v26  ;;  %1484 = vmatpush3.bf16.msra.mxu1 %v1483_v2  ;;  %v142_v26 = vshrl.u32 %v141_v15, 7 }
  0xf7   :  { %1462 = vmatprep.subr.bf16.mxu0 %v1461_v28  ;;  %1486 = vmatprep.subr.bf16.mxu1 %v1485_v3  ;;  %v1036_v28 = vld [vmem:[%s2217_s8 + $0x58] sm:$0xff] }
  0xf8   :  { %v1499_v29 = vpack.c.bf16 %v1036_v28, %v1035_v27  ;;  %v155_v31 = vsub.s32 3, %v142_v26  ;;  %v2154_v43 = vsub.s32 1, %v142_v26  ;;  %v151_v58 = vsub.s32 2, %v142_v26 }
  0xf9   :  { %v159_v7 = vsub.s32 4, %v142_v26 }
  0xfa   :  { %1464 = vmatpush1.bf16.msra.mxu0 %v1463_v32  ;;  %1488 = vmatpush3.bf16.msra.mxu1 %v1487_v8  ;;  %v139_v32 = vld [vmem:[#allocation7] sm:$0x3f]  ;;  %v597_v35 = vrot.slane %v580_v33, %v155_v31  ;;  %v593_v60 = vrot.slane %v580_v33, %v151_v58  ;;  %v163_v8 = vsub.s32 5, %v142_v26 }
  0xfb   :  { %1466 = vmatprep.subr.bf16.mxu0 %v1465_v36  ;;  %1490 = vmatprep.subr.bf16.mxu1 %v1489_v9  ;;  %v156_v34 = vrot.slane %v139_v32, %v155_v31  ;;  %v148_v47 = vrot.slane %v139_v32, %v2154_v43  ;;  %v152_v61 = vrot.slane %v139_v32, %v151_v58 }
  0xfc   :  { %v160_v9 = vrot.slane %v139_v32, %v159_v7  ;;  %v601_v10 = vrot.slane %v580_v33, %v159_v7  ;;  %v605_v12 = vrot.slane %v580_v33, %v163_v8  ;;  %v164_v13 = vrot.slane %v139_v32, %v163_v8 }
  0xfe   :  { %1468 = vmatpush1.bf16.msra.mxu0 %v1467_v40  ;;  %1492 = vmatpush3.bf16.msra.mxu1 %v1491_v14 }
  0xff   :  { %1470 = vmatprep.subr.bf16.mxu0 %v1469_v42  ;;  %1494 = vmatprep.subr.bf16.mxu1 %v1493_v16  ;;  %v2152_v42 = vsub.s32 0, %v142_v26 }
 0x101   :  { %v144_v44 = vrot.slane %v139_v32, %v2152_v42  ;;  %v585_v46 = vrot.slane %v580_v33, %v2152_v42 }
 0x102   :  { %1472 = vmatpush1.bf16.msra.mxu0 %v1471_v48  ;;  %1496 = vmatpush3.bf16.msra.mxu1 %v1495_v24  ;;  %v589_v48 = vrot.slane %v580_v33, %v2154_v43 }
 0x103   :  { %1474 = vmatprep.subr.bf16.mxu0 %v1473_v30  ;;  %1498 = vmatprep.subr.bf16.mxu1 %v1497_v0  ;;  %v1509_v30 = vadd.f32 %v585_v46, %v144_v44  ;;  %v1037_v44 = vld [vmem:[%s2217_s8 + $0x60] sm:$0xff]  ;;  %v1038_v46 = vld [vmem:[%s2217_s8 + $0x68] sm:$0xff] }
 0x104   :  { %v1511_v50 = vadd.f32 %v589_v48, %v148_v47  ;;  %v1055_v47 = vld [vmem:[%s2217_s8 + $0xf0] sm:$0xff]  ;;  %v1056_v48 = vld [vmem:[%s2217_s8 + $0xf8] sm:$0xff] }
 0x106   :  { %1476 = vmatpush1.bf16.msra.mxu0 %v1475_v51  ;;  %1500 = vmatpush3.bf16.msra.mxu1 %v1499_v29 }
 0x153   :  { %v2017_v19 = vpop.f32.mrb[2].mxu0 }
 0x154   :  { %v2025_v25 = vpop.f32.mrb[3].mxu0  ;;  %v313_v3 = vadd.f32 %v2017_v19, %v152_v61 }
 0x155   :  { %v315_v38 = vadd.f32 %v2025_v25, %v156_v34 }
 0x15b   :  { %v2057_v41 = vpop.f32.mrb[4].mxu0 }
 0x15c   :  { %v2065_v45 = vpop.f32.mrb[5].mxu0  ;;  %v384_v15 = vadd.f32 %v2057_v41, %v160_v9 }
 0x15d   :  { %v386_v26 = vadd.f32 %v2065_v45, %v164_v13  ;;  %v1054_v45 = vld [vmem:[%s2217_s8 + $0xe8] sm:$0xff] }
 0x184   :  { %v752_v36 = vpop.f32.mrb[0].mxu1 }
 0x185   :  { %v754_v37 = vpop.f32.mrb[1].mxu1  ;;  %v753_v1 = vadd.f32 %v752_v36, %v593_v60 }
 0x186   :  { %v755_v39 = vadd.f32 %v754_v37, %v597_v35 }
 0x188   :  { %v849_v40 = vadd.f32 %v755_v39, %v315_v38 }
 0x18a   :  { %v1159_v55 = vmul.f32 -1.442695, %v849_v40 }
 0x19b   :  { %v681_v49 = vpop.f32.mrb[0].mxu0 }
 0x19c   :  { %v1510_v51 = vadd.f32 %v1509_v30, %v681_v49  ;;  %v683_v52 = vpop.f32.mrb[1].mxu0  ;;  %v1505_v30 = vpack.c.bf16 %v1056_v48, %v1055_v47  ;;  %v1039_v49 = vld [vmem:[%s2217_s8 + $0x70] sm:$0xff] }
 0x19d   :  { %v1512_v53 = vadd.f32 %v1511_v50, %v683_v52  ;;  %v1040_v50 = vld [vmem:[%s2217_s8 + $0x78] sm:$0xff]  ;;  %v934_v52 = vld [vmem:[#allocation11] sm:$0x3] }
 0x19e   :  { %v1157_v25 = vmul.f32 -1.442695, %v1510_v51  ;;  %v1507_v51 = vpack.c.bf16 %v1040_v50, %v1039_v49 }
 0x19f   :  { %v1158_v54 = vmul.f32 -1.442695, %v1512_v53  ;;  %v1017_v53 = vld [vmem:[%s2219_s10] sm:$0xff]  ;;  %s1720_s10 = smov [#allocation13]  }
 0x1a0   :  { %1527 = vpow2.f32 %v1157_v25  ;;  %v939_v25 = vrot.slane %v934_v52, %v2152_v42  ;;  %v1161_v42 = vld [vmem:[%s2218_s9] ss:$0 sm:$0xff]  ;;  %s1142_s3 = sshll.u32 %s1720_s10, 4  ;;  %s1143_s3 = int_to_ptr.vmem [resolvable:$true] %s1142_s3 }
 0x1a1   :  { %1529 = vpow2.f32 %v1158_v54  ;;  %v943_v54 = vrot.slane %v934_v52, %v2154_v43  ;;  %s1679_s28 = scalar_lea.vmem %s1143_s3, 64  ;;  %p1684_p7 = scmp.lt.s32.totalorder %s1143_s3, %s1143_s3 }
 0x1a2   :  { %1531 = vpow2.f32 %v1159_v55  ;;  %p1680_p6 = scmp.ne.s32.totalorder %s1143_s3, %s1679_s28  ;;  %p1685_p8 = scmp.lt.s32.totalorder %s1679_s28, %s1679_s28 }
 0x1a4   :  { %p1686_p9 = por %p1685_p8, %p1684_p7 }
 0x1a6   :  { %p1687_p10 = pnand %p1686_p9, %p1680_p6 }
 0x1aa   :  { %v1528_v56 = vpop.eup %1527 }
 0x1ab   :  { %v832_v57 = vadd.f32 1.0, %v1528_v56  ;;  %v1530_v59 = vpop.eup %1529  ;;  %v1019_v56 = vcombine.high %v1017_v53, %v1017_v53 }
 0x1ac   :  { %v839_v62 = vadd.f32 1.0, %v1530_v59  ;;  %v1532_v63 = vpop.eup %1531 }
 0x1ad   :  { %1533 = vrcp.f32 %v832_v57  ;;  %v853_v5 = vadd.f32 1.0, %v1532_v63 }
 0x1ae   :  { %1535 = vrcp.f32 %v839_v62 }
 0x1b7   :  { %v1534_v2 = vpop.eup %1533 }
 0x1b8   :  { %v842_v4 = vmul.f32 %v1534_v2, %v753_v1  ;;  %v1536_v11 = vpop.eup %1535 }
 0x1b9   :  { %v845_v18 = vsub.f32 1.0, %v1536_v11  ;;  %v847_v27 = vmul.f32 %v1536_v11, %v1867_v21  ;;  %v1053_v21 = vld [vmem:[%s2217_s8 + $0xe0] sm:$0xff] }
 0x1ba   :  { %v843_v6 = vadd.f32 %v842_v4, %v313_v3  ;;  %v1501_v40 = vpack.c.bf16 %v1054_v45, %v1053_v21 }
 0x1bc   :  { %1537 = vtanh.f32 %v843_v6  ;;  %1502 = vmatprep.subr.bf16.mxu1 %v1501_v40 }
 0x1bd   :  { %1539 = vrcp.f32 %v853_v5 }
 0x1c4   :  { %v823_v14 = vpop.f32.mrb[2].mxu1 }
 0x1c5   :  { %v824_v16 = vadd.f32 %v823_v14, %v601_v10  ;;  %v825_v17 = vpop.f32.mrb[3].mxu1 }
 0x1c6   :  { %v1538_v19 = vpop.eup %1537  ;;  %v826_v20 = vadd.f32 %v825_v17, %v605_v12 }
 0x1c7   :  { %v1540_v22 = vpop.eup %1539  ;;  %v856_v24 = vadd.f32 %v824_v16, %v384_v15  ;;  %v846_v0 = vmul.f32 %v1538_v19, %v845_v18 }
 0x1c8   :  { %v863_v28 = vmul.f32 %v1540_v22, %v826_v20 }
 0x1c9   :  { %v1160_v29 = vmul.f32 -1.442695, %v856_v24  ;;  %v848_v31 = vadd.f32 %v847_v27, %v846_v0 }
 0x1ca   :  { %v864_v33 = vadd.f32 %v863_v28, %v386_v26 }
 0x1cb   :  { %1541 = vpow2.f32 %v1160_v29  ;;  %1010 = vmatprep.mubr.f32.mxu0 %v848_v31 }
 0x1d5   :  { %v1542_v32 = vpop.eup %1541 }
 0x1d6   :  { %v860_v41 = vadd.f32 1.0, %v1542_v32 }
 0x1d8   :  { %1543 = vrcp.f32 %v860_v41 }
 0x1d9   :  { %1545 = vtanh.f32 %v864_v33 }
 0x1e2   :  { %v1544_v34 = vpop.eup %1543 }
 0x1e3   :  { %v866_v35 = vsub.f32 1.0, %v1544_v34  ;;  %v1546_v36 = vpop.eup %1545  ;;  %v868_v38 = vmul.f32 %v1544_v34, %v1871_v23  ;;  %v1503_v23 = vpack.c.bf16 %v1038_v46, %v1037_v44 }
 0x1e5   :  { %v867_v37 = vmul.f32 %v1546_v36, %v866_v35  ;;  %1504 = vmatpush3.bf16.msra.mxu1 %v1503_v23 }
 0x1e6   :  { %1506 = vmatprep.subr.bf16.mxu1 %v1505_v30 }
 0x1e7   :  { %v869_v39 = vadd.f32 %v868_v38, %v867_v37 }
 0x1e9   :  { %1011 = vmatmul.mubr.f32.vlgmr.msra.gmra.mrb[6].mxu0 %v869_v39  ;;  %1508 = vmatpush3.bf16.msra.mxu1 %v1507_v51 }
 0x2bc   :  { %v1012_v55 = vpop.f32.mrb[6].mxu0 }
 0x2bd   :  { %v1013_v57 = vadd.f32 %v1012_v55, %v939_v25  ;;  %v1014_v58 = vpop.f32.mrb[7].mxu0 }
 0x2be   :  { %v1015_v59 = vadd.f32 %v1014_v58, %v943_v54 }
 0x2bf   :  { %v1021_v60 = vmul.f32 %v1017_v53, %v1013_v57 }
 0x2c0   :  { %v1022_v61 = vmul.f32 %v1019_v56, %v1015_v59 }
 0x2c1   :  { %v1023_v63 = vmax.f32 %v1021_v60, 0.0 }
 0x2c2   :  { %v1024_v62 = vmax.f32 %v1022_v61, 0.0 }
 0x2c4   :  { %1128 = vmatprep.mubr.f32.mxu1 %v1024_v62 }
 0x2c5   :  { %1129 = vmatmul.mubr.f32.vlgmr.msra.gmra.mrb[4].mxu1 %v1023_v63 }
 0x398   :  { %v1194_v1 = vpop.f32.mrb[4].mxu1 }
 0x399   :  { %v1195_v2 = vpop.f32.mrb[5].mxu1 }
 0x39a   :  { %v1196_v43 = vadd.f32 %v1195_v2, %v1194_v1 }
 0x39c   :  { %v1131_v3 = vadd.f32 %v1196_v43, %v1161_v42 }
 0x39e   :  { %1135 = vst.msk [vmem:[#allocation13] sm:$0xf] %vm1134_vm1, %v1131_v3 }
 0x39f   :  { %1690 = shalt.err (!%p1687_p10)
}
 0x3a0   :  { %s1691_s21 = scalar_lea.hbm %s2220_s11, 64 }
 0x3a1   :  { %p1692_p11 = scmp.ne.s32.totalorder %s2220_s11, %s1691_s21  ;;  %p1695_p12 = scmp.lt.u32.totalorder %s1691_s21, %s2220_s11 }
 0x3a3   :  { %p1697_p13 = pnand %p1695_p12, %p1692_p11 }
 0x3a5   :  { %1700 = shalt.err (!%p1697_p13)
}
 0x3a6   :  { %1145 = dma.vmem_to_hbm [thread:$0]  %s1143_s3, 64, %s2220_s11, [#allocation4]  }
 0x3a7   :  { %1709 = dma.done.wait [#allocation4], 64  }
 0x3a8   :  { %1710 = vsyncadd [#allocation4], 4294967232 }
 0x3a9   :  { %1149 = vsyncpa [#allocation3], 1 }
 0x3aa   :  { %1150 = vsyncpa [#allocation6], 1 }
 0x3ab   :  { %1151 = vsyncpa [#allocation9], 1 }
 0x3ac   :  { %1152 = vsyncpa [#allocation12], 1 }
 0x3ad   :  { %1153 = vsyncpa [#allocation4], 1 }

</bundles_post_ra>
